<compile_context>
chip_gen: v5e
topology: v5e:2x2
jax: 0.10.0
libtpu: 0.0.40
codegen_flags: <defaults>
</compile_context>

<pallas_src>
import math
from functools import partial

import jax
import jax.numpy as jnp
from jax.experimental import pallas as pl
from jax.experimental.pallas import tpu as pltpu


# -----------------------------------------------------------------------------
# Fused full-stack Encoder kernel (grid = (batch, layer); all refs in VMEM)
# -----------------------------------------------------------------------------
def encoder_stack_kernel(x_ref,
                         ln1_g_ref, ln1_b_ref,
                         wqkv_ref, bqkv_ref, wo_ref, bo_ref,
                         ln2_g_ref, ln2_b_ref,
                         w1_ref, b1_ref, w2_ref, b2_ref,
                         out_ref,
                         act_ref, ctx_ref,
                         *, num_heads, d_k, d_model, eps):
    l = pl.program_id(1)
    D = d_model

    def f32(ref):
        return ref[...].astype(jnp.float32)

    # Initialize the resident activation from the input on the first layer step.
    @pl.when(l == 0)
    def _():
        act_ref[...] = x_ref[...].astype(jnp.float32)

    x = act_ref[...]                                # (S, D) running activation (f32)

    def layer_norm(v, g, b):
        # Mirrors the PyTorch module exactly: torch.var is unbiased (divide by D-1)
        # and eps is added to sqrt(var), not to var.
        mean = jnp.mean(v, axis=-1, keepdims=True)
        diff = v - mean
        var = jnp.sum(diff * diff, axis=-1, keepdims=True) * (1.0 / (D - 1))
        # Exact division kept (no approx reciprocal) so validation can be tight.
        return g * diff / (jnp.sqrt(var) + eps) + b

    # ---------------- MHA sublayer:  x + MHA(LN(x)) ----------------
    h = layer_norm(x, f32(ln1_g_ref), f32(ln1_b_ref))                     # (S, D)

    # Fused QKV projection (Wq / bq pre-scaled by 1/sqrt(d_k) in the wrapper).
    qkv = jnp.dot(h, f32(wqkv_ref), preferred_element_type=jnp.float32) + f32(bqkv_ref)
    Q = qkv[:, :D]
    K = qkv[:, D:2 * D]
    V = qkv[:, 2 * D:]

    # Per-head attention; each head's context goes into a contiguous (S, D) VMEM
    # buffer so the output projection is ONE (S,D)@(D,D) matmul (K = D, not d_k).
    # TODO(synk): for large num_heads / S switch to lax.fori_loop + flash-style
    # KV tiling (online softmax) to bound liveness and the O(S^2) scores buffer.
    for hd in range(num_heads):
        lo = hd * d_k
        qh = Q[:, lo:lo + d_k]                      # (S, d_k), pre-scaled
        kh = K[:, lo:lo + d_k]
        vh = V[:, lo:lo + d_k]

        # q @ k^T without an explicit in-kernel transpose (contract last dims).
        scores = jax.lax.dot_general(qh, kh, (((1,), (1,)), ((), ())),
                                     preferred_element_type=jnp.float32)  # (S, S)
        # TODO(synk): optional src_mask (None in this config) and training-mode
        # attention dropout are not implemented (eval-mode identity).
        m = jnp.max(scores, axis=-1, keepdims=True)
        e = jnp.exp(scores - m)
        probs = e / jnp.sum(e, axis=-1, keepdims=True)                    # exact softmax

        ctx_ref[:, lo:lo + d_k] = jnp.dot(probs, vh,
                                          preferred_element_type=jnp.float32)

    attn = jnp.dot(ctx_ref[...], f32(wo_ref),
                   preferred_element_type=jnp.float32) + f32(bo_ref)
    x1 = x + attn                                                          # residual

    # ---------------- FFN sublayer:  x1 + FFN(LN(x1)) ----------------
    h2 = layer_norm(x1, f32(ln2_g_ref), f32(ln2_b_ref))
    f = jnp.dot(h2, f32(w1_ref), preferred_element_type=jnp.float32) + f32(b1_ref)
    f = jnp.maximum(f, 0.0)
    # TODO(synk): FFN / residual dropout not implemented (identity in eval mode).
    f = jnp.dot(f, f32(w2_ref), preferred_element_type=jnp.float32) + f32(b2_ref)
    x_new = x1 + f

    act_ref[...] = x_new                            # carry to the next layer step

    @pl.when(l == pl.num_programs(1) - 1)
    def _():
        out_ref[...] = x_new.astype(out_ref.dtype)


def encoder_stack(x, kp, *, num_heads, eps):
    """All encoder layers in one fused pallas_call.

    x:  [B, S, D] activations after embedding + positional encoding.
    kp: dict of per-layer parameter stacks, each with a leading L axis,
        pre-transposed to x @ W layout (QKV fused, scale folded into Wq/bq).
    """
    B, S, D = x.shape
    L = kp["wqkv"].shape[0]
    d_ff = kp["w1"].shape[2]
    d_k = D // num_heads

    # Activation / output: one batch element per grid step, resident across layers.
    act_spec = pl.BlockSpec((None, S, D), lambda b, l: (b, 0, 0))

    def wspec(shape):
        # Per-layer weight slab: squeeze the leading L axis, index by layer step.
        nd = len(shape)
        return pl.BlockSpec((None,) + tuple(shape),
                            lambda b, l, _nd=nd: (l,) + (0,) * _nd)

    kernel = partial(encoder_stack_kernel, num_heads=num_heads, d_k=d_k,
                     d_model=D, eps=eps)

    return pl.pallas_call(
        kernel,
        out_shape=jax.ShapeDtypeStruct((B, S, D), x.dtype),
        grid_spec=pltpu.PrefetchScalarGridSpec(
            num_scalar_prefetch=0,
            grid=(B, L),
            in_specs=[act_spec,
                      wspec((1, D)), wspec((1, D)),          # LN1 gamma / beta
                      wspec((D, 3 * D)), wspec((1, 3 * D)),  # fused QKV weight / bias
                      wspec((D, D)), wspec((1, D)),          # W_o / b_o
                      wspec((1, D)), wspec((1, D)),          # LN2 gamma / beta
                      wspec((D, d_ff)), wspec((1, d_ff)),    # FFN layer 1
                      wspec((d_ff, D)), wspec((1, D))],      # FFN layer 2
            out_specs=act_spec,
            scratch_shapes=[pltpu.VMEM((S, D), jnp.float32),   # resident activation
                            pltpu.VMEM((S, D), jnp.float32)],  # attention context
        ),
        compiler_params=pltpu.CompilerParams(
            dimension_semantics=("parallel", "arbitrary"),
            # TODO(synk): when scaling D/d_ff raise this toward ~100 MiB on v5e/v6e,
            # keep <= ~48 MiB on v7x, add Buffered(1)/d_ff tiling for the weights.
            vmem_limit_bytes=32 * 1024 * 1024),
    )(x, kp["ln1_g"], kp["ln1_b"], kp["wqkv"], kp["bqkv"], kp["wo"], kp["bo"],
      kp["ln2_g"], kp["ln2_b"], kp["w1"], kp["b1"], kp["w2"], kp["b2"])


# -----------------------------------------------------------------------------
# Encoder wrapper: embedding + positional encoding (plain JAX) + fused Pallas stack
# -----------------------------------------------------------------------------
def encoder_forward(tokens, params, *, num_heads, eps):
    """tokens: [B, S] int32 token ids -> [B, S, D]."""
    d_model = params["embedding"].shape[1]
    S = tokens.shape[1]
    # TODO(synk): embedding gather + positional-encoding add stay in the JAX
    # wrapper (data-dependent gather has no clean rectangular BlockSpec).
    x = jnp.take(params["embedding"], tokens, axis=0) * math.sqrt(d_model)
    x = x + params["pos_encoding"][None, :S, :]
    return encoder_stack(x, params["stacked"], num_heads=num_heads, eps=eps)


# -----------------------------------------------------------------------------
# Parameter init (PyTorch-style) and kernel-layout preparation
# -----------------------------------------------------------------------------
def _linear_init(key, in_f, out_f):
    bound = 1.0 / math.sqrt(in_f)
    kw, kb = jax.random.split(key)
    w = jax.random.uniform(kw, (out_f, in_f), jnp.float32, -bound, bound)
    b = jax.random.uniform(kb, (out_f,), jnp.float32, -bound, bound)
    return w, b


def _init_raw_params(key, *, d_model, d_ff, vocab_size, num_layers):
    keys = jax.random.split(key, num_layers + 1)
    emb = jax.random.normal(keys[0], (vocab_size, d_model), jnp.float32)
    layers = []
    for li in range(num_layers):
        lk = jax.random.split(keys[li + 1], 6)
        wq, bq = _linear_init(lk[0], d_model, d_model)
        wk, bk = _linear_init(lk[1], d_model, d_model)
        wv, bv = _linear_init(lk[2], d_model, d_model)
        wo, bo = _linear_init(lk[3], d_model, d_model)
        w1, b1 = _linear_init(lk[4], d_model, d_ff)
        w2, b2 = _linear_init(lk[5], d_ff, d_model)
        layers.append(dict(
            wq=wq, bq=bq, wk=wk, bk=bk, wv=wv, bv=bv, wo=wo, bo=bo,
            w1=w1, b1=b1, w2=w2, b2=b2,
            ln1_g=jnp.ones((d_model,), jnp.float32),
            ln1_b=jnp.zeros((d_model,), jnp.float32),
            ln2_g=jnp.ones((d_model,), jnp.float32),
            ln2_b=jnp.zeros((d_model,), jnp.float32)))
    return dict(embedding=emb, layers=layers)


def _positional_encoding(max_seq_len, d_model):
    pos = jnp.arange(max_seq_len, dtype=jnp.float32)[:, None]
    div_term = jnp.exp(jnp.arange(0, d_model, 2, dtype=jnp.float32)
                       * (-math.log(10000.0) / d_model))
    pe = jnp.zeros((max_seq_len, d_model), jnp.float32)
    pe = pe.at[:, 0::2].set(jnp.sin(pos * div_term))
    pe = pe.at[:, 1::2].set(jnp.cos(pos * div_term))
    return pe


def _prep_kernel_params(raw, *, num_heads, param_dtype=jnp.bfloat16):
    """Stack all layers (leading L axis), pre-transpose to x@W layout, fuse QKV,
    fold 1/sqrt(d_k) into Wq/bq, and cast to the storage dtype (bf16 by default
    to halve weight DMA bytes; the kernel casts back to f32 for compute)."""
    d_model = raw["embedding"].shape[1]
    d_k = d_model // num_heads
    inv = 1.0 / math.sqrt(d_k)

    def stack(fn):
        return jnp.stack([fn(L) for L in raw["layers"]]).astype(param_dtype)

    return dict(
        ln1_g=stack(lambda L: L["ln1_g"].reshape(1, d_model)),
        ln1_b=stack(lambda L: L["ln1_b"].reshape(1, d_model)),
        wqkv=stack(lambda L: jnp.concatenate(
            [L["wq"].T * inv, L["wk"].T, L["wv"].T], axis=1)),
        bqkv=stack(lambda L: jnp.concatenate(
            [L["bq"] * inv, L["bk"], L["bv"]]).reshape(1, 3 * d_model)),
        wo=stack(lambda L: L["wo"].T),
        bo=stack(lambda L: L["bo"].reshape(1, d_model)),
        ln2_g=stack(lambda L: L["ln2_g"].reshape(1, d_model)),
        ln2_b=stack(lambda L: L["ln2_b"].reshape(1, d_model)),
        w1=stack(lambda L: L["w1"].T),
        b1=stack(lambda L: L["b1"].reshape(1, -1)),
        w2=stack(lambda L: L["w2"].T),
        b2=stack(lambda L: L["b2"].reshape(1, d_model)),
    )


# -----------------------------------------------------------------------------
# Pure-JAX reference mirroring the PyTorch Encoder (eval mode, src_mask=None)
# -----------------------------------------------------------------------------
def _reference(tokens, raw, pe, *, num_heads, eps):
    d_model = raw["embedding"].shape[1]
    d_k = d_model // num_heads
    B, S = tokens.shape
    x = raw["embedding"][tokens] * math.sqrt(d_model)
    x = x + pe[None, :S, :]

    def lin(t, w, b):
        return t @ w.T + b

    def layer_norm(v, g, b):
        mean = jnp.mean(v, axis=-1, keepdims=True)
        var = jnp.sum((v - mean) ** 2, axis=-1, keepdims=True) / (d_model - 1)
        return g * (v - mean) / (jnp.sqrt(var) + eps) + b

    for L in raw["layers"]:
        h = layer_norm(x, L["ln1_g"], L["ln1_b"])
        Q = lin(h, L["wq"], L["bq"]).reshape(B, S, num_heads, d_k).transpose(0, 2, 1, 3)
        K = lin(h, L["wk"], L["bk"]).reshape(B, S, num_heads, d_k).transpose(0, 2, 1, 3)
        V = lin(h, L["wv"], L["bv"]).reshape(B, S, num_heads, d_k).transpose(0, 2, 1, 3)
        scores = jnp.einsum("bhqd,bhkd->bhqk", Q, K) / math.sqrt(d_k)
        probs = jax.nn.softmax(scores, axis=-1)
        ctx = jnp.einsum("bhqk,bhkd->bhqd", probs, V)
        ctx = ctx.transpose(0, 2, 1, 3).reshape(B, S, d_model)
        x = x + lin(ctx, L["wo"], L["bo"])
        h2 = layer_norm(x, L["ln2_g"], L["ln2_b"])
        f = lin(jnp.maximum(lin(h2, L["w1"], L["b1"]), 0.0), L["w2"], L["b2"])
        x = x + f
    return x


# -----------------------------------------------------------------------------
if __name__ == "__main__":
    B, S = 2, 8
    d_model, num_heads, d_ff = 32, 4, 64
    vocab_size, num_layers = 64, 2
    eps = 1e-6
    max_seq_len = 16

    root = jax.random.PRNGKey(0)
    k_tok, k_par = jax.random.split(root)
    tokens = jax.random.randint(k_tok, (B, S), 0, vocab_size, dtype=jnp.int32)

    raw = _init_raw_params(k_par, d_model=d_model, d_ff=d_ff,
                           vocab_size=vocab_size, num_layers=num_layers)
    pe = _positional_encoding(max_seq_len, d_model)

    with jax.default_matmul_precision("float32"):
        ref = _reference(tokens, raw, pe, num_heads=num_heads, eps=eps)

    # ---- Check 1: f32-stored params, TIGHT tolerance (validates kernel math). ----
    params_f32 = dict(embedding=raw["embedding"], pos_encoding=pe,
                      stacked=_prep_kernel_params(raw, num_heads=num_heads,
                                                  param_dtype=jnp.float32))
    out_f32 = jax.block_until_ready(
        encoder_forward(tokens, params_f32, num_heads=num_heads, eps=eps))
    assert out_f32.shape == (B, S, d_model)
    # Exact softmax division (no approx reciprocal); residual tolerance only covers
    # MXU f32 multi-pass rounding / accumulation-order differences.
    assert jnp.allclose(out_f32, ref, atol=5e-3, rtol=5e-3), \
        "f32 kernel mismatch vs reference"

    # ---- Check 2: bf16-stored params (production perf config). ----
    params_bf16 = dict(embedding=raw["embedding"], pos_encoding=pe,
                       stacked=_prep_kernel_params(raw, num_heads=num_heads,
                                                   param_dtype=jnp.bfloat16))
    out_bf16 = jax.block_until_ready(
        encoder_forward(tokens, params_bf16, num_heads=num_heads, eps=eps))
    # Looser tolerance here reflects ONLY bf16 weight-storage quantization vs the
    # f32 reference; kernel-math correctness is already pinned by the tight f32 check.
    assert jnp.allclose(out_bf16, ref, atol=6e-2, rtol=6e-2), \
        "bf16 kernel mismatch vs reference"

    print("KERNEL_OK")
</pallas_src>

<mosaic_0001>
module attributes {stable_mosaic.version = 11 : i64} {
  func.func @encoder_stack_kernel(%arg0: i32, %arg1: i32, %arg2: memref<1x8x32xf32, #tpu.memory_space<vmem>>, %arg3: memref<1x1x32xf32, #tpu.memory_space<vmem>>, %arg4: memref<1x1x32xf32, #tpu.memory_space<vmem>>, %arg5: memref<1x32x96xf32, #tpu.memory_space<vmem>>, %arg6: memref<1x1x96xf32, #tpu.memory_space<vmem>>, %arg7: memref<1x32x32xf32, #tpu.memory_space<vmem>>, %arg8: memref<1x1x32xf32, #tpu.memory_space<vmem>>, %arg9: memref<1x1x32xf32, #tpu.memory_space<vmem>>, %arg10: memref<1x1x32xf32, #tpu.memory_space<vmem>>, %arg11: memref<1x32x64xf32, #tpu.memory_space<vmem>>, %arg12: memref<1x1x64xf32, #tpu.memory_space<vmem>>, %arg13: memref<1x64x32xf32, #tpu.memory_space<vmem>>, %arg14: memref<1x1x32xf32, #tpu.memory_space<vmem>>, %arg15: memref<1x8x32xf32, #tpu.memory_space<vmem>>, %arg16: memref<8x32xf32, #tpu.memory_space<vmem>>, %arg17: memref<8x32xf32, #tpu.memory_space<vmem>>) attributes {dimension_semantics = [#tpu.dimension_semantics<parallel>, #tpu.dimension_semantics<arbitrary>], iteration_bounds = array<i64: 2, 2>, scalar_prefetch = 0 : i64, scratch_operands = 2 : i64, tpu.core_type = #tpu.core_type<tc>, window_params = [{transform_indices = @transform_0, window_bounds = array<i64: 1, 8, 32>}, {transform_indices = @transform_1, window_bounds = array<i64: 1, 1, 32>}, {transform_indices = @transform_2, window_bounds = array<i64: 1, 1, 32>}, {transform_indices = @transform_3, window_bounds = array<i64: 1, 32, 96>}, {transform_indices = @transform_4, window_bounds = array<i64: 1, 1, 96>}, {transform_indices = @transform_5, window_bounds = array<i64: 1, 32, 32>}, {transform_indices = @transform_6, window_bounds = array<i64: 1, 1, 32>}, {transform_indices = @transform_7, window_bounds = array<i64: 1, 1, 32>}, {transform_indices = @transform_8, window_bounds = array<i64: 1, 1, 32>}, {transform_indices = @transform_9, window_bounds = array<i64: 1, 32, 64>}, {transform_indices = @transform_10, window_bounds = array<i64: 1, 1, 64>}, {transform_indices = @transform_11, window_bounds = array<i64: 1, 64, 32>}, {transform_indices = @transform_12, window_bounds = array<i64: 1, 1, 32>}, {transform_indices = @transform_13, window_bounds = array<i64: 1, 8, 32>}]} {
    %c0_i32 = arith.constant 0 : i32
    %0 = arith.cmpi eq, %arg1, %c0_i32 : i32
    %1 = arith.extui %0 : i1 to i32
    %c0_i32_0 = arith.constant 0 : i32
    %2 = arith.cmpi ne, %1, %c0_i32_0 : i32
    scf.if %2 {
      %c0_78 = arith.constant 0 : index
      %c0_79 = arith.constant 0 : index
      %c0_80 = arith.constant 0 : index
      %152 = vector.load %arg2[%c0_78, %c0_79, %c0_80] : memref<1x8x32xf32, #tpu.memory_space<vmem>>, vector<1x8x32xf32>
      %153 = vector.shape_cast %152 : vector<1x8x32xf32> to vector<8x32xf32>
      %c0_81 = arith.constant 0 : index
      %c0_82 = arith.constant 0 : index
      %154 = vector.load %arg16[%c0_81, %c0_82] : memref<8x32xf32, #tpu.memory_space<vmem>>, vector<8x32xf32>
      tpu.vector_store %arg16[%c0_81, %c0_82], %153 {strides = array<i32>} : memref<8x32xf32, #tpu.memory_space<vmem>>, vector<8x32xf32>,
    } else {
    }
    %c0 = arith.constant 0 : index
    %c0_1 = arith.constant 0 : index
    %3 = vector.load %arg16[%c0, %c0_1] : memref<8x32xf32, #tpu.memory_space<vmem>>, vector<8x32xf32>
    %c0_2 = arith.constant 0 : index
    %c0_3 = arith.constant 0 : index
    %c0_4 = arith.constant 0 : index
    %4 = vector.load %arg3[%c0_2, %c0_3, %c0_4] : memref<1x1x32xf32, #tpu.memory_space<vmem>>, vector<1x1x32xf32>
    %5 = vector.shape_cast %4 : vector<1x1x32xf32> to vector<1x32xf32>
    %c0_5 = arith.constant 0 : index
    %c0_6 = arith.constant 0 : index
    %c0_7 = arith.constant 0 : index
    %6 = vector.load %arg4[%c0_5, %c0_6, %c0_7] : memref<1x1x32xf32, #tpu.memory_space<vmem>>, vector<1x1x32xf32>
    %7 = vector.shape_cast %6 : vector<1x1x32xf32> to vector<1x32xf32>
    %cst = arith.constant dense<0.000000e+00> : vector<8xf32>
    %8 = vector.multi_reduction <add>, %3, %cst [1] : vector<8x32xf32> to vector<8xf32>
    %9 = vector.shape_cast %8 : vector<8xf32> to vector<8x1xf32>
    %cst_8 = arith.constant 3.200000e+01 : f32
    %10 = vector.broadcast %cst_8 : f32 to vector<8x1xf32>
    %11 = arith.divf %9, %10 : vector<8x1xf32>
    %12 = vector.broadcast %11 : vector<8x1xf32> to vector<8x32xf32>
    %13 = arith.subf %3, %12 : vector<8x32xf32>
    %14 = arith.mulf %13, %13 : vector<8x32xf32>
    %cst_9 = arith.constant dense<0.000000e+00> : vector<8xf32>
    %15 = vector.multi_reduction <add>, %14, %cst_9 [1] : vector<8x32xf32> to vector<8xf32>
    %16 = vector.shape_cast %15 : vector<8xf32> to vector<8x1xf32>
    %cst_10 = arith.constant 0.0322580636 : f32
    %17 = vector.broadcast %cst_10 : f32 to vector<8x1xf32>
    %18 = arith.mulf %16, %17 : vector<8x1xf32>
    %19 = vector.broadcast %5 : vector<1x32xf32> to vector<8x32xf32>
    %20 = arith.mulf %19, %13 : vector<8x32xf32>
    %21 = math.sqrt %18 : vector<8x1xf32>
    %cst_11 = arith.constant 9.99999997E-7 : f32
    %22 = vector.broadcast %cst_11 : f32 to vector<8x1xf32>
    %23 = arith.addf %21, %22 : vector<8x1xf32>
    %24 = vector.broadcast %23 : vector<8x1xf32> to vector<8x32xf32>
    %25 = arith.divf %20, %24 : vector<8x32xf32>
    %26 = vector.broadcast %7 : vector<1x32xf32> to vector<8x32xf32>
    %27 = arith.addf %25, %26 : vector<8x32xf32>
    %c0_12 = arith.constant 0 : index
    %c0_13 = arith.constant 0 : index
    %c0_14 = arith.constant 0 : index
    %28 = vector.load %arg5[%c0_12, %c0_13, %c0_14] : memref<1x32x96xf32, #tpu.memory_space<vmem>>, vector<1x32x96xf32>
    %29 = vector.shape_cast %28 : vector<1x32x96xf32> to vector<32x96xf32>
    %cst_15 = arith.constant dense<0.000000e+00> : vector<8x96xf32>
    %30 = tpu.matmul %27, %29, %cst_15 {dimension_numbers = #tpu.dot_dimension_numbers<[1], [0], [0], [1], [0, 0, 1, 1], [], []>} : vector<8x32xf32>, vector<32x96xf32>, vector<8x96xf32> -> vector<8x96xf32>
    %c0_16 = arith.constant 0 : index
    %c0_17 = arith.constant 0 : index
    %c0_18 = arith.constant 0 : index
    %31 = vector.load %arg6[%c0_16, %c0_17, %c0_18] : memref<1x1x96xf32, #tpu.memory_space<vmem>>, vector<1x1x96xf32>
    %32 = vector.shape_cast %31 : vector<1x1x96xf32> to vector<1x96xf32>
    %33 = vector.broadcast %32 : vector<1x96xf32> to vector<8x96xf32>
    %34 = arith.addf %30, %33 : vector<8x96xf32>
    %35 = vector.extract_strided_slice %34 {offsets = [0, 0], sizes = [8, 32], strides = [1, 1]} : vector<8x96xf32> to vector<8x32xf32>
    %36 = vector.extract_strided_slice %34 {offsets = [0, 32], sizes = [8, 32], strides = [1, 1]} : vector<8x96xf32> to vector<8x32xf32>
    %37 = vector.extract_strided_slice %34 {offsets = [0, 64], sizes = [8, 32], strides = [1, 1]} : vector<8x96xf32> to vector<8x32xf32>
    %38 = vector.extract_strided_slice %35 {offsets = [0, 0], sizes = [8, 8], strides = [1, 1]} : vector<8x32xf32> to vector<8x8xf32>
    %39 = vector.extract_strided_slice %36 {offsets = [0, 0], sizes = [8, 8], strides = [1, 1]} : vector<8x32xf32> to vector<8x8xf32>
    %40 = vector.extract_strided_slice %37 {offsets = [0, 0], sizes = [8, 8], strides = [1, 1]} : vector<8x32xf32> to vector<8x8xf32>
    %cst_19 = arith.constant dense<0.000000e+00> : vector<8x8xf32>
    %41 = tpu.matmul %38, %39, %cst_19 {dimension_numbers = #tpu.dot_dimension_numbers<[1], [1], [0], [0], [0, 0, 1, 0], [], []>} : vector<8x8xf32>, vector<8x8xf32>, vector<8x8xf32> -> vector<8x8xf32>
    %cst_20 = arith.constant dense<0xFF800000> : vector<8xf32>
    %42 = vector.multi_reduction <maximumf>, %41, %cst_20 [1] : vector<8x8xf32> to vector<8xf32>
    %43 = vector.shape_cast %42 : vector<8xf32> to vector<8x1xf32>
    %44 = vector.broadcast %43 : vector<8x1xf32> to vector<8x8xf32>
    %45 = arith.subf %41, %44 : vector<8x8xf32>
    %46 = math.exp %45 : vector<8x8xf32>
    %cst_21 = arith.constant dense<0.000000e+00> : vector<8xf32>
    %47 = vector.multi_reduction <add>, %46, %cst_21 [1] : vector<8x8xf32> to vector<8xf32>
    %48 = vector.shape_cast %47 : vector<8xf32> to vector<8x1xf32>
    %49 = vector.broadcast %48 : vector<8x1xf32> to vector<8x8xf32>
    %50 = arith.divf %46, %49 : vector<8x8xf32>
    %cst_22 = arith.constant dense<0.000000e+00> : vector<8x8xf32>
    %51 = tpu.matmul %50, %40, %cst_22 {dimension_numbers = #tpu.dot_dimension_numbers<[1], [0], [0], [1], [0, 0, 1, 1], [], []>} : vector<8x8xf32>, vector<8x8xf32>, vector<8x8xf32> -> vector<8x8xf32>
    %c0_23 = arith.constant 0 : index
    %c0_24 = arith.constant 0 : index
    %52 = vector.load %arg17[%c0_23, %c0_24] : memref<8x32xf32, #tpu.memory_space<vmem>>, vector<8x8xf32>
    tpu.vector_store %arg17[%c0_23, %c0_24], %51 {strides = array<i32>} : memref<8x32xf32, #tpu.memory_space<vmem>>, vector<8x8xf32>,
    %53 = vector.extract_strided_slice %35 {offsets = [0, 8], sizes = [8, 8], strides = [1, 1]} : vector<8x32xf32> to vector<8x8xf32>
    %54 = vector.extract_strided_slice %36 {offsets = [0, 8], sizes = [8, 8], strides = [1, 1]} : vector<8x32xf32> to vector<8x8xf32>
    %55 = vector.extract_strided_slice %37 {offsets = [0, 8], sizes = [8, 8], strides = [1, 1]} : vector<8x32xf32> to vector<8x8xf32>
    %cst_25 = arith.constant dense<0.000000e+00> : vector<8x8xf32>
    %56 = tpu.matmul %53, %54, %cst_25 {dimension_numbers = #tpu.dot_dimension_numbers<[1], [1], [0], [0], [0, 0, 1, 0], [], []>} : vector<8x8xf32>, vector<8x8xf32>, vector<8x8xf32> -> vector<8x8xf32>
    %cst_26 = arith.constant dense<0xFF800000> : vector<8xf32>
    %57 = vector.multi_reduction <maximumf>, %56, %cst_26 [1] : vector<8x8xf32> to vector<8xf32>
    %58 = vector.shape_cast %57 : vector<8xf32> to vector<8x1xf32>
    %59 = vector.broadcast %58 : vector<8x1xf32> to vector<8x8xf32>
    %60 = arith.subf %56, %59 : vector<8x8xf32>
    %61 = math.exp %60 : vector<8x8xf32>
    %cst_27 = arith.constant dense<0.000000e+00> : vector<8xf32>
    %62 = vector.multi_reduction <add>, %61, %cst_27 [1] : vector<8x8xf32> to vector<8xf32>
    %63 = vector.shape_cast %62 : vector<8xf32> to vector<8x1xf32>
    %64 = vector.broadcast %63 : vector<8x1xf32> to vector<8x8xf32>
    %65 = arith.divf %61, %64 : vector<8x8xf32>
    %cst_28 = arith.constant dense<0.000000e+00> : vector<8x8xf32>
    %66 = tpu.matmul %65, %55, %cst_28 {dimension_numbers = #tpu.dot_dimension_numbers<[1], [0], [0], [1], [0, 0, 1, 1], [], []>} : vector<8x8xf32>, vector<8x8xf32>, vector<8x8xf32> -> vector<8x8xf32>
    %c0_29 = arith.constant 0 : index
    %c8 = arith.constant 8 : index
    %67 = vector.load %arg17[%c0_29, %c8] : memref<8x32xf32, #tpu.memory_space<vmem>>, vector<8x8xf32>
    tpu.vector_store %arg17[%c0_29, %c8], %66 {strides = array<i32>} : memref<8x32xf32, #tpu.memory_space<vmem>>, vector<8x8xf32>,
    %68 = vector.extract_strided_slice %35 {offsets = [0, 16], sizes = [8, 8], strides = [1, 1]} : vector<8x32xf32> to vector<8x8xf32>
    %69 = vector.extract_strided_slice %36 {offsets = [0, 16], sizes = [8, 8], strides = [1, 1]} : vector<8x32xf32> to vector<8x8xf32>
    %70 = vector.extract_strided_slice %37 {offsets = [0, 16], sizes = [8, 8], strides = [1, 1]} : vector<8x32xf32> to vector<8x8xf32>
    %cst_30 = arith.constant dense<0.000000e+00> : vector<8x8xf32>
    %71 = tpu.matmul %68, %69, %cst_30 {dimension_numbers = #tpu.dot_dimension_numbers<[1], [1], [0], [0], [0, 0, 1, 0], [], []>} : vector<8x8xf32>, vector<8x8xf32>, vector<8x8xf32> -> vector<8x8xf32>
    %cst_31 = arith.constant dense<0xFF800000> : vector<8xf32>
    %72 = vector.multi_reduction <maximumf>, %71, %cst_31 [1] : vector<8x8xf32> to vector<8xf32>
    %73 = vector.shape_cast %72 : vector<8xf32> to vector<8x1xf32>
    %74 = vector.broadcast %73 : vector<8x1xf32> to vector<8x8xf32>
    %75 = arith.subf %71, %74 : vector<8x8xf32>
    %76 = math.exp %75 : vector<8x8xf32>
    %cst_32 = arith.constant dense<0.000000e+00> : vector<8xf32>
    %77 = vector.multi_reduction <add>, %76, %cst_32 [1] : vector<8x8xf32> to vector<8xf32>
    %78 = vector.shape_cast %77 : vector<8xf32> to vector<8x1xf32>
    %79 = vector.broadcast %78 : vector<8x1xf32> to vector<8x8xf32>
    %80 = arith.divf %76, %79 : vector<8x8xf32>
    %cst_33 = arith.constant dense<0.000000e+00> : vector<8x8xf32>
    %81 = tpu.matmul %80, %70, %cst_33 {dimension_numbers = #tpu.dot_dimension_numbers<[1], [0], [0], [1], [0, 0, 1, 1], [], []>} : vector<8x8xf32>, vector<8x8xf32>, vector<8x8xf32> -> vector<8x8xf32>
    %c0_34 = arith.constant 0 : index
    %c16 = arith.constant 16 : index
    %82 = vector.load %arg17[%c0_34, %c16] : memref<8x32xf32, #tpu.memory_space<vmem>>, vector<8x8xf32>
    tpu.vector_store %arg17[%c0_34, %c16], %81 {strides = array<i32>} : memref<8x32xf32, #tpu.memory_space<vmem>>, vector<8x8xf32>,
    %83 = vector.extract_strided_slice %35 {offsets = [0, 24], sizes = [8, 8], strides = [1, 1]} : vector<8x32xf32> to vector<8x8xf32>
    %84 = vector.extract_strided_slice %36 {offsets = [0, 24], sizes = [8, 8], strides = [1, 1]} : vector<8x32xf32> to vector<8x8xf32>
    %85 = vector.extract_strided_slice %37 {offsets = [0, 24], sizes = [8, 8], strides = [1, 1]} : vector<8x32xf32> to vector<8x8xf32>
    %cst_35 = arith.constant dense<0.000000e+00> : vector<8x8xf32>
    %86 = tpu.matmul %83, %84, %cst_35 {dimension_numbers = #tpu.dot_dimension_numbers<[1], [1], [0], [0], [0, 0, 1, 0], [], []>} : vector<8x8xf32>, vector<8x8xf32>, vector<8x8xf32> -> vector<8x8xf32>
    %cst_36 = arith.constant dense<0xFF800000> : vector<8xf32>
    %87 = vector.multi_reduction <maximumf>, %86, %cst_36 [1] : vector<8x8xf32> to vector<8xf32>
    %88 = vector.shape_cast %87 : vector<8xf32> to vector<8x1xf32>
    %89 = vector.broadcast %88 : vector<8x1xf32> to vector<8x8xf32>
    %90 = arith.subf %86, %89 : vector<8x8xf32>
    %91 = math.exp %90 : vector<8x8xf32>
    %cst_37 = arith.constant dense<0.000000e+00> : vector<8xf32>
    %92 = vector.multi_reduction <add>, %91, %cst_37 [1] : vector<8x8xf32> to vector<8xf32>
    %93 = vector.shape_cast %92 : vector<8xf32> to vector<8x1xf32>
    %94 = vector.broadcast %93 : vector<8x1xf32> to vector<8x8xf32>
    %95 = arith.divf %91, %94 : vector<8x8xf32>
    %cst_38 = arith.constant dense<0.000000e+00> : vector<8x8xf32>
    %96 = tpu.matmul %95, %85, %cst_38 {dimension_numbers = #tpu.dot_dimension_numbers<[1], [0], [0], [1], [0, 0, 1, 1], [], []>} : vector<8x8xf32>, vector<8x8xf32>, vector<8x8xf32> -> vector<8x8xf32>
    %c0_39 = arith.constant 0 : index
    %c24 = arith.constant 24 : index
    %97 = vector.load %arg17[%c0_39, %c24] : memref<8x32xf32, #tpu.memory_space<vmem>>, vector<8x8xf32>
    tpu.vector_store %arg17[%c0_39, %c24], %96 {strides = array<i32>} : memref<8x32xf32, #tpu.memory_space<vmem>>, vector<8x8xf32>,
    %c0_40 = arith.constant 0 : index
    %c0_41 = arith.constant 0 : index
    %98 = vector.load %arg17[%c0_40, %c0_41] : memref<8x32xf32, #tpu.memory_space<vmem>>, vector<8x32xf32>
    %c0_42 = arith.constant 0 : index
    %c0_43 = arith.constant 0 : index
    %c0_44 = arith.constant 0 : index
    %99 = vector.load %arg7[%c0_42, %c0_43, %c0_44] : memref<1x32x32xf32, #tpu.memory_space<vmem>>, vector<1x32x32xf32>
    %100 = vector.shape_cast %99 : vector<1x32x32xf32> to vector<32x32xf32>
    %cst_45 = arith.constant dense<0.000000e+00> : vector<8x32xf32>
    %101 = tpu.matmul %98, %100, %cst_45 {dimension_numbers = #tpu.dot_dimension_numbers<[1], [0], [0], [1], [0, 0, 1, 1], [], []>} : vector<8x32xf32>, vector<32x32xf32>, vector<8x32xf32> -> vector<8x32xf32>
    %c0_46 = arith.constant 0 : index
    %c0_47 = arith.constant 0 : index
    %c0_48 = arith.constant 0 : index
    %102 = vector.load %arg8[%c0_46, %c0_47, %c0_48] : memref<1x1x32xf32, #tpu.memory_space<vmem>>, vector<1x1x32xf32>
    %103 = vector.shape_cast %102 : vector<1x1x32xf32> to vector<1x32xf32>
    %104 = vector.broadcast %103 : vector<1x32xf32> to vector<8x32xf32>
    %105 = arith.addf %101, %104 : vector<8x32xf32>
    %106 = arith.addf %3, %105 : vector<8x32xf32>
    %c0_49 = arith.constant 0 : index
    %c0_50 = arith.constant 0 : index
    %c0_51 = arith.constant 0 : index
    %107 = vector.load %arg9[%c0_49, %c0_50, %c0_51] : memref<1x1x32xf32, #tpu.memory_space<vmem>>, vector<1x1x32xf32>
    %108 = vector.shape_cast %107 : vector<1x1x32xf32> to vector<1x32xf32>
    %c0_52 = arith.constant 0 : index
    %c0_53 = arith.constant 0 : index
    %c0_54 = arith.constant 0 : index
    %109 = vector.load %arg10[%c0_52, %c0_53, %c0_54] : memref<1x1x32xf32, #tpu.memory_space<vmem>>, vector<1x1x32xf32>
    %110 = vector.shape_cast %109 : vector<1x1x32xf32> to vector<1x32xf32>
    %cst_55 = arith.constant dense<0.000000e+00> : vector<8xf32>
    %111 = vector.multi_reduction <add>, %106, %cst_55 [1] : vector<8x32xf32> to vector<8xf32>
    %112 = vector.shape_cast %111 : vector<8xf32> to vector<8x1xf32>
    %cst_56 = arith.constant 3.200000e+01 : f32
    %113 = vector.broadcast %cst_56 : f32 to vector<8x1xf32>
    %114 = arith.divf %112, %113 : vector<8x1xf32>
    %115 = vector.broadcast %114 : vector<8x1xf32> to vector<8x32xf32>
    %116 = arith.subf %106, %115 : vector<8x32xf32>
    %117 = arith.mulf %116, %116 : vector<8x32xf32>
    %cst_57 = arith.constant dense<0.000000e+00> : vector<8xf32>
    %118 = vector.multi_reduction <add>, %117, %cst_57 [1] : vector<8x32xf32> to vector<8xf32>
    %119 = vector.shape_cast %118 : vector<8xf32> to vector<8x1xf32>
    %cst_58 = arith.constant 0.0322580636 : f32
    %120 = vector.broadcast %cst_58 : f32 to vector<8x1xf32>
    %121 = arith.mulf %119, %120 : vector<8x1xf32>
    %122 = vector.broadcast %108 : vector<1x32xf32> to vector<8x32xf32>
    %123 = arith.mulf %122, %116 : vector<8x32xf32>
    %124 = math.sqrt %121 : vector<8x1xf32>
    %cst_59 = arith.constant 9.99999997E-7 : f32
    %125 = vector.broadcast %cst_59 : f32 to vector<8x1xf32>
    %126 = arith.addf %124, %125 : vector<8x1xf32>
    %127 = vector.broadcast %126 : vector<8x1xf32> to vector<8x32xf32>
    %128 = arith.divf %123, %127 : vector<8x32xf32>
    %129 = vector.broadcast %110 : vector<1x32xf32> to vector<8x32xf32>
    %130 = arith.addf %128, %129 : vector<8x32xf32>
    %c0_60 = arith.constant 0 : index
    %c0_61 = arith.constant 0 : index
    %c0_62 = arith.constant 0 : index
    %131 = vector.load %arg11[%c0_60, %c0_61, %c0_62] : memref<1x32x64xf32, #tpu.memory_space<vmem>>, vector<1x32x64xf32>
    %132 = vector.shape_cast %131 : vector<1x32x64xf32> to vector<32x64xf32>
    %cst_63 = arith.constant dense<0.000000e+00> : vector<8x64xf32>
    %133 = tpu.matmul %130, %132, %cst_63 {dimension_numbers = #tpu.dot_dimension_numbers<[1], [0], [0], [1], [0, 0, 1, 1], [], []>} : vector<8x32xf32>, vector<32x64xf32>, vector<8x64xf32> -> vector<8x64xf32>
    %c0_64 = arith.constant 0 : index
    %c0_65 = arith.constant 0 : index
    %c0_66 = arith.constant 0 : index
    %134 = vector.load %arg12[%c0_64, %c0_65, %c0_66] : memref<1x1x64xf32, #tpu.memory_space<vmem>>, vector<1x1x64xf32>
    %135 = vector.shape_cast %134 : vector<1x1x64xf32> to vector<1x64xf32>
    %136 = vector.broadcast %135 : vector<1x64xf32> to vector<8x64xf32>
    %137 = arith.addf %133, %136 : vector<8x64xf32>
    %cst_67 = arith.constant 0.000000e+00 : f32
    %138 = vector.broadcast %cst_67 : f32 to vector<8x64xf32>
    %139 = arith.maximumf %137, %138 : vector<8x64xf32>
    %c0_68 = arith.constant 0 : index
    %c0_69 = arith.constant 0 : index
    %c0_70 = arith.constant 0 : index
    %140 = vector.load %arg13[%c0_68, %c0_69, %c0_70] : memref<1x64x32xf32, #tpu.memory_space<vmem>>, vector<1x64x32xf32>
    %141 = vector.shape_cast %140 : vector<1x64x32xf32> to vector<64x32xf32>
    %cst_71 = arith.constant dense<0.000000e+00> : vector<8x32xf32>
    %142 = tpu.matmul %139, %141, %cst_71 {dimension_numbers = #tpu.dot_dimension_numbers<[1], [0], [0], [1], [0, 0, 1, 1], [], []>} : vector<8x64xf32>, vector<64x32xf32>, vector<8x32xf32> -> vector<8x32xf32>
    %c0_72 = arith.constant 0 : index
    %c0_73 = arith.constant 0 : index
    %c0_74 = arith.constant 0 : index
    %143 = vector.load %arg14[%c0_72, %c0_73, %c0_74] : memref<1x1x32xf32, #tpu.memory_space<vmem>>, vector<1x1x32xf32>
    %144 = vector.shape_cast %143 : vector<1x1x32xf32> to vector<1x32xf32>
    %145 = vector.broadcast %144 : vector<1x32xf32> to vector<8x32xf32>
    %146 = arith.addf %142, %145 : vector<8x32xf32>
    %147 = arith.addf %106, %146 : vector<8x32xf32>
    %c0_75 = arith.constant 0 : index
    %c0_76 = arith.constant 0 : index
    %148 = vector.load %arg16[%c0_75, %c0_76] : memref<8x32xf32, #tpu.memory_space<vmem>>, vector<8x32xf32>
    tpu.vector_store %arg16[%c0_75, %c0_76], %147 {strides = array<i32>} : memref<8x32xf32, #tpu.memory_space<vmem>>, vector<8x32xf32>,
    %c1_i32 = arith.constant 1 : i32
    %149 = arith.cmpi eq, %arg1, %c1_i32 : i32
    %150 = arith.extui %149 : i1 to i32
    %c0_i32_77 = arith.constant 0 : i32
    %151 = arith.cmpi ne, %150, %c0_i32_77 : i32
    scf.if %151 {
      %c0_78 = arith.constant 0 : index
      %c0_79 = arith.constant 0 : index
      %c0_80 = arith.constant 0 : index
      %152 = vector.load %arg15[%c0_78, %c0_79, %c0_80] : memref<1x8x32xf32, #tpu.memory_space<vmem>>, vector<1x8x32xf32>
      %153 = vector.shape_cast %152 : vector<1x8x32xf32> to vector<8x32xf32>
      %154 = vector.shape_cast %147 : vector<8x32xf32> to vector<1x8x32xf32>
      tpu.vector_store %arg15[%c0_78, %c0_79, %c0_80], %154 {strides = array<i32>} : memref<1x8x32xf32, #tpu.memory_space<vmem>>, vector<1x8x32xf32>,
    } else {
    }
    return
  }
  func.func @transform_0(%arg0: i32, %arg1: i32) -> (i32, i32, i32) {
    %c0_i32 = arith.constant 0 : i32
    %c0_i32_0 = arith.constant 0 : i32
    %c0_i32_1 = arith.constant 0 : i32
    return %arg0, %c0_i32, %c0_i32_0 : i32, i32, i32
  }
  func.func @transform_1(%arg0: i32, %arg1: i32) -> (i32, i32, i32) {
    %c0_i32 = arith.constant 0 : i32
    %c0_i32_0 = arith.constant 0 : i32
    %c0_i32_1 = arith.constant 0 : i32
    return %arg1, %c0_i32, %c0_i32_0 : i32, i32, i32
  }
  func.func @transform_2(%arg0: i32, %arg1: i32) -> (i32, i32, i32) {
    %c0_i32 = arith.constant 0 : i32
    %c0_i32_0 = arith.constant 0 : i32
    %c0_i32_1 = arith.constant 0 : i32
    return %arg1, %c0_i32, %c0_i32_0 : i32, i32, i32
  }
  func.func @transform_3(%arg0: i32, %arg1: i32) -> (i32, i32, i32) {
    %c0_i32 = arith.constant 0 : i32
    %c0_i32_0 = arith.constant 0 : i32
    %c0_i32_1 = arith.constant 0 : i32
    return %arg1, %c0_i32, %c0_i32_0 : i32, i32, i32
  }
  func.func @transform_4(%arg0: i32, %arg1: i32) -> (i32, i32, i32) {
    %c0_i32 = arith.constant 0 : i32
    %c0_i32_0 = arith.constant 0 : i32
    %c0_i32_1 = arith.constant 0 : i32
    return %arg1, %c0_i32, %c0_i32_0 : i32, i32, i32
  }
  func.func @transform_5(%arg0: i32, %arg1: i32) -> (i32, i32, i32) {
    %c0_i32 = arith.constant 0 : i32
    %c0_i32_0 = arith.constant 0 : i32
    %c0_i32_1 = arith.constant 0 : i32
    return %arg1, %c0_i32, %c0_i32_0 : i32, i32, i32
  }
  func.func @transform_6(%arg0: i32, %arg1: i32) -> (i32, i32, i32) {
    %c0_i32 = arith.constant 0 : i32
    %c0_i32_0 = arith.constant 0 : i32
    %c0_i32_1 = arith.constant 0 : i32
    return %arg1, %c0_i32, %c0_i32_0 : i32, i32, i32
  }
  func.func @transform_7(%arg0: i32, %arg1: i32) -> (i32, i32, i32) {
    %c0_i32 = arith.constant 0 : i32
    %c0_i32_0 = arith.constant 0 : i32
    %c0_i32_1 = arith.constant 0 : i32
    return %arg1, %c0_i32, %c0_i32_0 : i32, i32, i32
  }
  func.func @transform_8(%arg0: i32, %arg1: i32) -> (i32, i32, i32) {
    %c0_i32 = arith.constant 0 : i32
    %c0_i32_0 = arith.constant 0 : i32
    %c0_i32_1 = arith.constant 0 : i32
    return %arg1, %c0_i32, %c0_i32_0 : i32, i32, i32
  }
  func.func @transform_9(%arg0: i32, %arg1: i32) -> (i32, i32, i32) {
    %c0_i32 = arith.constant 0 : i32
    %c0_i32_0 = arith.constant 0 : i32
    %c0_i32_1 = arith.constant 0 : i32
    return %arg1, %c0_i32, %c0_i32_0 : i32, i32, i32
  }
  func.func @transform_10(%arg0: i32, %arg1: i32) -> (i32, i32, i32) {
    %c0_i32 = arith.constant 0 : i32
    %c0_i32_0 = arith.constant 0 : i32
    %c0_i32_1 = arith.constant 0 : i32
    return %arg1, %c0_i32, %c0_i32_0 : i32, i32, i32
  }
  func.func @transform_11(%arg0: i32, %arg1: i32) -> (i32, i32, i32) {
    %c0_i32 = arith.constant 0 : i32
    %c0_i32_0 = arith.constant 0 : i32
    %c0_i32_1 = arith.constant 0 : i32
    return %arg1, %c0_i32, %c0_i32_0 : i32, i32, i32
  }
  func.func @transform_12(%arg0: i32, %arg1: i32) -> (i32, i32, i32) {
    %c0_i32 = arith.constant 0 : i32
    %c0_i32_0 = arith.constant 0 : i32
    %c0_i32_1 = arith.constant 0 : i32
    return %arg1, %c0_i32, %c0_i32_0 : i32, i32, i32
  }
  func.func @transform_13(%arg0: i32, %arg1: i32) -> (i32, i32, i32) {
    %c0_i32 = arith.constant 0 : i32
    %c0_i32_0 = arith.constant 0 : i32
    %c0_i32_1 = arith.constant 0 : i32
    return %arg0, %c0_i32, %c0_i32_0 : i32, i32, i32
  }
}

</mosaic_0001>

<bundles_post_ra>
// kernel: tpu_custom_call.1
= control target key start
LH: loop header
LB: loop body
LE: loop exit
PB: predicated region body
PF: predicated region fallthrough
CT: control target
= control target key end

     0   :  { %s2585_s0 = inlined_call_operand.hbm [shape: f32[2,8,32], index: 0, kind: input, shape index: {}]   ;;  %s2586_s1 = inlined_call_operand.hbm [shape: f32[2,1,32], index: 1, kind: input, shape index: {}]   ;;  %s2587_s2 = inlined_call_operand.hbm [shape: f32[2,1,32], index: 2, kind: input, shape index: {}]   ;;  %s2588_s3 = inlined_call_operand.vmem [shape: f32[2,32,96], index: 3, kind: input, shape index: {}]   ;;  %s2589_s4 = inlined_call_operand.vmem [shape: f32[2,1,96], index: 4, kind: input, shape index: {}]   ;;  %s2590_s5 = inlined_call_operand.vmem [shape: f32[2,32,32], index: 5, kind: input, shape index: {}]   ;;  %s2591_s6 = inlined_call_operand.vmem [shape: f32[2,1,32], index: 6, kind: input, shape index: {}]   ;;  %s2592_s7 = inlined_call_operand.hbm [shape: f32[2,1,32], index: 7, kind: input, shape index: {}]   ;;  %s2593_s8 = inlined_call_operand.hbm [shape: f32[2,1,32], index: 8, kind: input, shape index: {}]   ;;  %s2594_s9 = inlined_call_operand.vmem [shape: f32[2,32,64], index: 9, kind: input, shape index: {}]   ;;  %s2595_s10 = inlined_call_operand.vmem [shape: f32[2,1,64], index: 10, kind: input, shape index: {}]   ;;  %s2596_s11 = inlined_call_operand.vmem [shape: f32[2,64,32], index: 11, kind: input, shape index: {}]   ;;  %s2597_s12 = inlined_call_operand.vmem [shape: f32[2,1,32], index: 12, kind: input, shape index: {}]   ;;  %s2598_s13 = inlined_call_operand.hbm [shape: f32[2,8,32], index: 13, kind: output, shape index: {}]  }
   0x1   :  { %2611 = sst [smem:[#allocation32_spill]] %s2585_s0 }
   0x2   :  { %2612 = sst [smem:[#allocation33_spill]] %s2586_s1 }
   0x3   :  { %2613 = sst [smem:[#allocation34_spill]] %s2587_s2 }
   0x4   :  { %2614 = sst [smem:[#allocation35_spill]] %s2588_s3 }
   0x5   :  { %2615 = sst [smem:[#allocation36_spill]] %s2589_s4 }
   0x6   :  { %2616 = sst [smem:[#allocation37_spill]] %s2590_s5 }
   0x7   :  { %2617 = sst [smem:[#allocation38_spill]] %s2591_s6 }
   0x8   :  { %2618 = sst [smem:[#allocation39_spill]] %s2592_s7 }
   0x9   :  { %2619 = sst [smem:[#allocation40_spill]] %s2593_s8 }
   0xa   :  { %2620 = sst [smem:[#allocation41_spill]] %s2594_s9 }
   0xb   :  { %2621 = sst [smem:[#allocation42_spill]] %s2595_s10 }
   0xc   :  { %2622 = sst [smem:[#allocation43_spill]] %s2596_s11 }
   0xd   :  { %2623 = sst [smem:[#allocation44_spill]] %s2597_s12 }
   0xe   :  { %2624 = sst [smem:[#allocation45_spill]] %s2598_s13 }
   0xf   :  { %18 = vsyncpa [#allocation5], 0 }
  0x10   :  { %20 = vsyncpa [#allocation5 + $0x1], 0 }
  0x11   :  { %21 = vsyncpa [#allocation8], 0 }
  0x12   :  { %23 = vsyncpa [#allocation8 + $0x1], 0 }
  0x13   :  { %24 = vsyncpa [#allocation11], 0 }
  0x14   :  { %26 = vsyncpa [#allocation11 + $0x1], 0 }
  0x15   :  { %27 = vsyncpa [#allocation6], 0 }
  0x16   :  { %29 = vsyncpa [#allocation6 + $0x1], 0  ;;  %s2154_s25 = smov 0   ;;  %s2156_s26 = smov 0  }
  0x17   :  { %s2158_s27 = smov 0   ;;  %s2160_s28 = smov 0  }
  0x18   :  { %s2162_s29 = smov 0   ;;  %s2164_s30 = smov 0  }
  0x19   :  { %s2166_s14 = smov 0   ;;  %s2168_s15 = smov 0  }
  0x1a   :  { %s2170_s16 = smov 0   ;;  %s2172_s17 = smov 0  }
  0x1b   :  { %s2174_s18 = smov 0  }
  0x1c LB: > { %2625 = sst [smem:[#allocation18_spill]] %s2031_s26  ;;  %s44_s19 = sadd.s32 1, %s2059_s16  ;;  %s2067_s18 = sphi %s2174_s18, %s35_s18   ;;  %s2063_s17 = sphi %s2172_s17, %s2685_s17   ;;  %s2059_s16 = sphi %s2170_s16, %s2684_s16   ;;  %s2055_s15 = sphi %s2168_s15, %s2683_s15   ;;  %s2051_s14 = sphi %s2166_s14, %s2682_s14   ;;  %s2047_s30 = sphi %s2164_s30, %s2681_s30   ;;  %s2043_s29 = sphi %s2162_s29, %s2680_s29   ;;  %s2039_s28 = sphi %s2160_s28, %s2679_s28   ;;  %s2035_s27 = sphi %s2158_s27, %s2678_s27   ;;  %s2031_s26 = sphi %s2156_s26, %s2677_s26   ;;  %s2027_s25 = sphi %s2154_s25, %s2676_s25  }
  0x1d   : > { %2626 = sst [smem:[#allocation19_spill]] %s2035_s27  ;;  %p62_p0 = scmp.eq.s32.totalorder %s2067_s18, 0 }
  0x1e   : > { %2627 = sst [smem:[#allocation20_spill]] %s2039_s28  ;;  %p2211_p1 = scmp.ge.s32.totalorder %s44_s19, 2 }
  0x1f   : > { %2628 = sst [smem:[#allocation21_spill]] %s2043_s29  ;;  %s80_s21 = sadd.s32 1, %s2035_s27 }
  0x20   : > { %2629 = sst [smem:[#allocation22_spill]] %s2047_s30  ;;  %p87_p2 = scmp.ne.s32.totalorder %s2035_s27, %s2031_s26 }
  0x21   : > { %2630 = sst [smem:[#allocation23_spill]] %s2051_s14  ;;  %p93_p3 = scmp.ne.s32.totalorder %s2031_s26, %s2027_s25 }
  0x22   : > { %2631 = sst [smem:[#allocation24_spill]] %s2055_s15  ;;  %s2687_s19 = smov (%p2211_p1, %s44_s19), 0 }
  0x23   : > { %2632 = sst [smem:[#allocation25_spill]] %s2059_s16  ;;  %p2226_p4 = por %p87_p2, %p62_p0 }
  0x24   : > { %2633 = sst [smem:[#allocation26_spill]] %s2063_s17  ;;  %s77_s23 = ssub.s32 %s2059_s16, %s2687_s19 }
  0x25   : > { %2635 = sst [smem:[#allocation27_spill]] %s2687_s19  ;;  %p1648_p5 = scmp.lt.s32.totalorder %s2067_s18, 4 }
  0x26   : > { %p78_p6 = scmp.eq.s32.totalorder %s77_s23, 0  ;;  %s448_s24 = sand.u32 1, %s2067_s18  }
  0x27   : > { %s2235_s13 = sand.u32 1, %s2035_s27   ;;  %s2638_s1 = sld [smem:[#allocation33_spill]] }
  0x28   : > { %s2238_s15 = scalar_select %p78_p6, %s2035_s27, %s80_s21  }
  0x29   : > { %s451_s6 = scalar_lea.vmem [#allocation7], %s2235_s13  ;;  %p2249_p7 = pnand %p1648_p5, %p2226_p4 }
  0x2a   : > { %2637 = sst [smem:[#allocation28_spill]] %s2238_s15  ;;  %s458_s5 = sshll.u32 %s451_s6, 4  ;;  %s459_s5 = int_to_ptr.vmem [resolvable:$true] %s458_s5 }
  0x2b   : > { %p1579_p8 = scmp.ge.s32.totalorder %s2067_s18, 1  ;;  %p570_p9 = scmp.lt.s32.totalorder %s2067_s18, 5 }
  0x2c   : > { %s2641_s7 = sld [smem:[#allocation39_spill]]  ;;  %s1574_s11 = sadd.s32 4294967294, %s2067_s18  }
  0x2d   : > { %s454_s10 = scalar_lea.hbm %s2638_s1, %s2059_s16  ;;  %p2260_p10 = pnand %p1579_p8, %p570_p9 }
  0x2e   : > { %s456_s9 = sshll.u32 %s454_s10, 4  ;;  %s2255_s10 = scalar_lea.sflag [#allocation8], %s448_s24  ;;  %s457_s9 = int_to_ptr.hbm [resolvable:$true] %s456_s9 }
  0x2f   : > { %1634 = dma.hbm_to_vmem [thread:$0]  (!%p2249_p7), %s457_s9, 16, %s459_s5, %s2255_s10  }
  0x30   : > { %s513_s1 = scalar_lea.vmem [#allocation10], %s2235_s13  ;;  %s2269_s5 = scalar_lea.sflag [#allocation11], %s448_s24 }
  0x31   : > { %s520_s19 = sshll.u32 %s513_s1, 4  ;;  %s2275_s9 = sadd.s32 4294967295, %s2067_s18   ;;  %s521_s19 = int_to_ptr.vmem [resolvable:$true] %s520_s19 }
  0x32   : > { %s516_s21 = scalar_lea.hbm %s2641_s7, %s2059_s16  ;;  %s47_s12 = sadd.s32 1, %s2063_s17 }
  0x33   : > { %s518_s22 = sshll.u32 %s516_s21, 4  ;;  %s54_s1 = sadd.s32 1, %s2047_s30  ;;  %s519_s22 = int_to_ptr.hbm [resolvable:$true] %s518_s22 }
  0x34   : > { %1640 = dma.hbm_to_vmem [thread:$0]  (!%p2249_p7), %s519_s22, 16, %s521_s19, %s2269_s5  }
  0x35   : > { %s2689_s12 = smov (!%p2211_p1, %s47_s12), %s2063_s17  ;;  %p61_p11 = scmp.ne.s32.totalorder %s2047_s30, %s2043_s29 }
  0x36   : > { %p67_p12 = scmp.ne.s32.totalorder %s2043_s29, %s2039_s28  ;;  %p49_p13 = scmp.ge.s32.totalorder %s2689_s12, 2 }
  0x37   : > { %p68_p2 = scmp.eq.s32.totalorder %s2275_s9, 0  ;;  %p2290_p4 = por %p62_p0, %p61_p11 }
  0x38   : > { %p403_p6 = scmp.eq.s32.totalorder %s2275_s9, 3  ;;  %s2691_s12 = smov (%p49_p13, %s2689_s12), 0 }
  0x39   : > { %2643 = sst [smem:[#allocation29_spill]] %s2691_s12  ;;  %p2300_p8 = por %p68_p2, %p67_p12 }
  0x3a   : > { %p2307_p1 = por %p93_p3, %p68_p2  ;;  %s51_s21 = ssub.s32 %s2063_s17, %s2691_s12 }
  0x3b   : > { %p2313_p0 = por %p403_p6, %p61_p11  ;;  %p52_p9 = scmp.eq.s32.totalorder %s51_s21, 0 }
  0x3c   : > { %p409_p13 = scmp.eq.s32.totalorder %s1574_s11, 3  ;;  %s429_s7 = sand.u32 1, %s2047_s30  }
  0x3d   : > { %s1578_s15 = sshll.u32 %s2063_s17, 3  ;;  %s1577_s3 = sshll.u32 %s429_s7, 3 }
  0x3e   : > { %s2320_s27 = scalar_select %p52_p9, %s2047_s30, %s54_s1  }
  0x3f   : > { %p2325_p3 = por %p409_p13, %p67_p12  ;;  %s2650_s0 = sld [smem:[#allocation32_spill]] }
  0x40   : > { %2647 = sst [smem:[#allocation30_spill]] %s2320_s27  ;;  %s433_s11 = scalar_lea.vmem [#allocation4], %s1577_s3 }
  0x41   : > { %s2648_s25 = scalar_select %p2325_p3, 1, 0 }
  0x42   : > { %s441_s17 = sshll.u32 %s433_s11, 4  ;;  %p1629_p11 = pnand %p1648_p5, %p2290_p4  ;;  %s442_s17 = int_to_ptr.vmem [resolvable:$true] %s441_s17 }
  0x43   : > { %2649 = sst [smem:[#allocation31_spill]] %s2648_s25  ;;  %s430_s12 = scalar_lea.sflag [#allocation5], %s429_s7 }
  0x44   : > { %s2651_s2 = sld [smem:[#allocation34_spill]]  ;;  %s2355_s7 = sand.u32 (!%p2260_p10), 1, %s2043_s29  }
  0x45   : > { %s437_s14 = scalar_lea.hbm %s2650_s0, %s1578_s15  ;;  %s468_s15 = scalar_lea.vmem [#allocation9], %s2235_s13 }
  0x46   : > { %s439_s21 = sshll.u32 %s437_s14, 4  ;;  %s475_s14 = sshll.u32 %s468_s15, 4  ;;  %s440_s21 = int_to_ptr.hbm [resolvable:$true] %s439_s21  ;;  %s476_s14 = int_to_ptr.vmem [resolvable:$true] %s475_s14 }
  0x47   : > { %1631 = dma.hbm_to_vmem [thread:$0]  (!%p1629_p11), %s440_s21, 128, %s442_s17, %s430_s12  }
  0x48   : > { %s2652_s8 = sld [smem:[#allocation40_spill]]  ;;  %s530_s0 = scalar_lea.vmem [#allocation12], %s2235_s13 }
  0x49   : > { %s537_s25 = sshll.u32 %s530_s0, 4  ;;  %s1580_s27 = sshll.u32 (!%p2260_p10), %s2355_s7, 3  ;;  %s538_s25 = int_to_ptr.vmem [resolvable:$true] %s537_s25 }
  0x4a   : > { %s471_s30 = scalar_lea.hbm %s2651_s2, %s2059_s16  ;;  %s580_s17 = scalar_lea.vmem (!%p2260_p10), [#allocation4], %s1580_s27 }
  0x4b   : > { %s473_s4 = sshll.u32 %s471_s30, 4  ;;  %s577_s30 = scalar_lea.sflag (!%p2260_p10), [#allocation5], %s2355_s7  ;;  %s474_s4 = int_to_ptr.hbm [resolvable:$true] %s473_s4 }
  0x4c   : > { %1637 = dma.hbm_to_vmem [thread:$0]  (!%p2249_p7), %s474_s4, 16, %s476_s14, %s2255_s10  }
  0x4d   : > { %574 = sbr.rel (%p2260_p10) target bundleno = 2418 (0x972), region = 72 }
  0x4e   : > { %s533_s19 = scalar_lea.hbm %s2652_s8, %s2059_s16 }
  0x4f   : > { %s535_s28 = sshll.u32 %s533_s19, 4  ;;  %s536_s28 = int_to_ptr.hbm [resolvable:$true] %s535_s28 }
  0x50   : > { %1643 = dma.hbm_to_vmem [thread:$0]  (!%p2249_p7), %s536_s28, 16, %s538_s25, %s2269_s5  }
  0x52   : > { %2010 = dma.done.wait (%p2300_p8), %s577_s30, 128  }
  0x53   : > { %2012 = vsyncadd (%p2300_p8), %s577_s30, 4294967168  ;;  %s586_s0 = sand.u32 1, %s2275_s9   ;;  %s2365_s13 = sand.u32 1, %s2031_s26  }
  0x54   : > { %s587_s28 = scalar_lea.sflag [#allocation8], %s586_s0 }
  0x55   : > { %2014 = dma.done.wait (%p2307_p1), %s587_s28, 32  }
  0x56   : > { %2016 = vsyncadd (%p2307_p1), %s587_s28, 4294967264  ;;  %s605_s6 = scalar_lea.sflag [#allocation11], %s586_s0 }
  0x57   : > { %2018 = dma.done.wait (%p2307_p1), %s605_s6, 32  }
  0x58   : > { %2020 = vsyncadd (%p2307_p1), %s605_s6, 4294967264  ;;  %s2653_s9 = sld [smem:[#allocation23_spill]]  ;;  %s2421_s6 = scalar_lea.vmem [#allocation13], %s1580_s27 }
  0x59   : > { %s2655_s14 = sld [smem:[#allocation35_spill]] }
  0x5a   : > { %s2656_s30 = sld [smem:[#allocation37_spill]] }
  0x5b   : > { %s2657_s5 = sld [smem:[#allocation38_spill]] }
  0x5c   : > { %s2658_s8 = sld [smem:[#allocation41_spill]] }
  0x5d   : > { %s2659_s4 = sld [smem:[#allocation42_spill]] }
  0x5e   : > { %p708_p5 = scmp.lt.s32.totalorder %s2653_s9, 1  ;;  %s2660_s29 = sld [smem:[#allocation43_spill]] }
  0x5f   : > { %s2661_s26 = sld [smem:[#allocation44_spill]]  ;;  %p1590_p7 = scmp.ne.s32.totalorder %s2653_s9, 0 }
  0x60   : > { %s2380_s20 = scalar_select %p708_p5, %s2653_s9, 1 }
  0x62   : > { %s1612_s25 = sshll.u32 %s2380_s20, 5  ;;  %s723_s10 = scalar_lea.vmem %s2657_s5, %s2380_s20 }
  0x63   : > { %s2390_s3 = scalar_lea.vmem %s2655_s14, %s1612_s25  ;;  %s2395_s0 = scalar_lea.vmem %s2656_s30, %s1612_s25 }
  0x64   : > { %s2404_s16 = scalar_lea.vmem %s2658_s8, %s1612_s25  ;;  %s731_s15 = scalar_lea.vmem %s2659_s4, %s2380_s20 }
  0x65   : > { %s1615_s24 = sshll.u32 %s2380_s20, 6  ;;  %s739_s28 = scalar_lea.vmem %s2661_s26, %s2380_s20 }
  0x66   : > { %s2414_s11 = scalar_lea.vmem %s2660_s29, %s1615_s24  ;;  %s616_s5 = scalar_lea.vmem [#allocation12], %s2365_s13 }
  0x67   : > { %743 = sbr.rel (%p1590_p7) target bundleno = 110 (0x6e), region = 96 }
  0x6c   : > { %v744_v0 = vld [vmem:[%s580_s17] sm:$0xff]  ;;  %vm745_vm0 = vcmask 261120  }
  0x6d   : > { %746 = vst.msk [vmem:[#allocation2] sm:$0xff] %vm745_vm0, %v744_v0 }
  0x6e PF: > { %vm750_vm1 = vcmask 261120   ;;  %v2069_v3 = vmov 32.0   ;;  %v807_v15 = vld [vmem:[%s2390_s3 + $0x18] sm:$0xff]  ;;  %v806_v16 = vld [vmem:[%s2390_s3 + $0x10] sm:$0xff]  ;;  %v805_v17 = vld [vmem:[%s2390_s3 + $0x8] sm:$0xff]  ;;  %s2662_s2 = scalar_lea.vmem [#allocation7], %s2365_s13 }
  0x6f   : > { %1761 = vrcp.f32 %v2069_v3  ;;  %827 = vmatpush.msra.mxu0 %v807_v15  ;;  %v804_v18 = vld [vmem:[%s2390_s3] sm:$0xff]  ;;  %s2663_s8 = scalar_lea.vmem [#allocation9], %s2365_s13  ;;  %s2664_s27 = sld [smem:[#allocation36_spill]]  ;;  %vm838_vm9 = vcmask 64512  }
  0x70   : > { %v1753_v36 = vld [vmem:[%s2662_s2] ss:$0 sm:$0xff]  ;;  %s2070_s23 = smov 64   ;;  %s2071_s9 = smov 120  }
  0x71   : > { %828 = vmatpush.msra.mxu0 %v806_v16  ;;  %v1754_v43 = vld [vmem:[%s2663_s8] ss:$0 sm:$0xff]  ;;  %s2072_s25 = smov 96   ;;  %s2073_s12 = smov 72  }
  0x72   : > { %s2074_s3 = smov 88   ;;  %s2075_s21 = smov 56  }
  0x73   : > { %829 = vmatpush.msra.mxu0 %v805_v17  ;;  %s2076_s1 = smov 80   ;;  %s2077_s4 = smov 104  }
  0x74   : > { %v2424_v1 = vld [vmem:[#allocation2] sm:$0xff]  ;;  %s2078_s24 = smov 112   ;;  %s2079_s14 = smov 48  }
  0x75   : > { %v751_v2 = vsel %vm750_vm1, %v2424_v1, 0.0  ;;  %v1762_v4 = vpop.eup %1761  ;;  %830 = vmatpush.msra.mxu0 %v804_v18  ;;  %s2665_s17 = scalar_lea.vmem %s2664_s27, %s2380_s20  ;;  %s2080_s19 = smov 8  }
  0x76   : > { %752 = vadd.xlane.f32.xlu0 %v751_v2  ;;  %v755_v5 = vmul.f32 32.0, %v1762_v4  ;;  %vm759_vm2 = vweird.f32 %v1762_v4  ;;  %v1755_v47 = vld [vmem:[%s2665_s17] ss:$0 sm:$0xff]  ;;  %s2081_s30 = smov 40   ;;  %s2082_s2 = smov 16  }
  0x77   : > { %s2083_s8 = smov 24  }
  0x78   : > { %v756_v6 = vsub.f32 1.0, %v755_v5 }
  0x7a   : > { %v757_v7 = vmul.f32 %v1762_v4, %v756_v6 }
  0x7c   : > { %v758_v8 = vadd.f32 %v1762_v4, %v757_v7 }
  0x7e   : > { %v2428_v9 = vsel %vm759_vm2, %v1762_v4, %v758_v8 }
  0xe9   : > { %v753_v10 = vpop.xlane.xlu0 %752 }
  0xea   : > { %v761_v11 = vmul.f32 %v2428_v9, %v753_v10 }
  0xec   : > { %v762_v12 = vsub.f32 %v2424_v1, %v761_v11 }
  0xee   : > { %v763_v13 = vmul.f32 %v762_v12, %v762_v12  ;;  %v771_v41 = vmul.f32 %v1753_v36, %v762_v12 }
  0xf0   : > { %v764_v14 = vsel %vm750_vm1, %v763_v13, 0.0 }
  0xf1   : > { %765 = vadd.xlane.f32.xlu0 %v764_v14 }
 0x164   : > { %v766_v19 = vpop.xlane.xlu0 %765 }
 0x165   : > { %v767_v20 = vmul.f32 0.032258064, %v766_v19 }
 0x167   : > { %1763 = vrsqrt.f32 %v767_v20  ;;  %vm779_vm3 = vcmp.eq.f32.partialorder %v767_v20, inf  ;;  %v782_v28 = vand.u32 2147483648, %v767_v20  ;;  %vm781_vm4 = vcmp.eq.f32.partialorder %v767_v20, 0.0 }
 0x16d   : > { %v1764_v21 = vpop.eup %1763 }
 0x16e   : > { %v773_v22 = vmul.f32 %v1764_v21, %v767_v20 }
 0x170   : > { %v774_v23 = vmul.f32 %v1764_v21, %v773_v22 }
 0x172   : > { %v775_v24 = vmul.f32 0.5, %v774_v23 }
 0x174   : > { %v776_v25 = vsub.f32 1.5, %v775_v24 }
 0x176   : > { %v777_v26 = vmul.f32 %v1764_v21, %v776_v25 }
 0x178   : > { %v778_v27 = vmul.f32 %v777_v26, %v767_v20 }
 0x17a   : > { %v780_v29 = vsel %vm779_vm3, %v767_v20, %v778_v27 }
 0x17b   : > { %v783_v30 = vsel %vm781_vm4, %v782_v28, %v780_v29 }
 0x17c   : > { %v784_v31 = vadd.f32 1e-06, %v783_v30 }
 0x17e   : > { %1765 = vrcp.f32 %v784_v31  ;;  %v796_v35 = vand.u32 2147483648, %v784_v31  ;;  %v794_v38 = vand.u32 2147483647, %v784_v31  ;;  %vm790_vm6 = vweird.f32 %v784_v31 }
 0x180   : > { %v797_v40 = vor.u32 1.1754944e-38, %v796_v35  ;;  %vm795_vm8 = vcmp.eq.f32.partialorder %v794_v38, 8.507059e+37 }
 0x184   : > { %v1766_v32 = vpop.eup %1765 }
 0x185   : > { %v786_v33 = vmul.f32 %v1766_v32, %v784_v31  ;;  %vm791_vm5 = vweird.f32 %v1766_v32 }
 0x186   : > { %vm792_vm7 = vmor %vm790_vm6, %vm791_vm5 }
 0x187   : > { %v787_v34 = vsub.f32 1.0, %v786_v33 }
 0x189   : > { %v788_v37 = vmul.f32 %v1766_v32, %v787_v34 }
 0x18b   : > { %v789_v39 = vadd.f32 %v1766_v32, %v788_v37 }
 0x18d   : > { %v793_v42 = vsel %vm792_vm7, %v1766_v32, %v789_v39  ;;  %vm996_vm7 = vcmask 130112  }
 0x18e   : > { %v798_v44 = vsel %vm795_vm8, %v797_v40, %v793_v42 }
 0x18f   : > { %v799_v45 = vmul.f32 %v798_v44, %v771_v41 }
 0x191   : > { %v803_v46 = vadd.f32 %v1754_v43, %v799_v45 }
 0x193   : > { %1591 = vmatmul.msk.f32.vlgmr.msra.gmra.mxu0 %vm750_vm1, %v803_v46 }
 0x210   : > { %v832_v48 = vpop.f32.mrf.mxu0 }
 0x211   : > { %v2447_v49 = vadd.f32 %v1755_v47, %v832_v48 }
 0x213   : > { %887 = vrot.lane.b32.xlu0 %v2447_v49, %s2070_s23  ;;  %914 = vrot.lane.b32.xlu2 %v2447_v49, %s2071_s9 }
 0x214   : > { %836 = vrot.lane.b32.xlu1 %v2447_v49, %s2072_s25 }
 0x21b   : > { %1084 = vrot.lane.b32.xlu0 %v2447_v49, %s2073_s12 }
 0x21c   : > { %916 = vrot.lane.b32.xlu1 %v2447_v49, %s2074_s3 }
 0x26d   : > { %v915_v53 = vpop.permute.xlu2 %914 }
 0x285   : > { %v888_v50 = vpop.permute.xlu0 %887 }
 0x286   : > { %v837_v51 = vpop.permute.xlu1 %836  ;;  %908 = vmatpush.msra.mxu2 %v888_v50 }
 0x287   : > { %1592 = vmatpush.xpose.msk.msra.mxu1 %vm838_vm9, %v837_v51 }
 0x28a   : > { %1593 = vmatmul.msk.f32.vlgmr.msra.gmra.mxu1 %vm838_vm9, %v2447_v49 }
 0x28d   : > { %v1085_v61 = vpop.permute.xlu0 %1084 }
 0x28e   : > { %v917_v52 = vpop.permute.xlu1 %916 }
 0x28f   : > { %1595 = vmatpush.xpose.msk.msra.mxu3 %vm838_vm9, %v917_v52 }
 0x292   : > { %1596 = vmatmul.msk.f32.vlgmr.msra.gmra.mxu3 %vm838_vm9, %v915_v53 }
 0x307   : > { %v860_v54 = vpop.f32.mrf.mxu1 }
 0x308   : > { %v863_v55 = vsel %vm838_vm9, %v860_v54, -inf }
 0x309   : > { %864 = vmax.xlane.f32.xlu2 %v863_v55 }
 0x315   : > { %v939_v56 = vpop.f32.mrf.mxu3 }
 0x316   : > { %v942_v57 = vsel %vm838_vm9, %v939_v56, -inf }
 0x317   : > { %943 = vmax.xlane.f32.xlu0 %v942_v57 }
 0x321   : > { %966 = vrot.lane.b32.xlu2 %v2447_v49, %s2075_s21 }
 0x32b   : > { %1000 = vrot.lane.b32.xlu0 %v2447_v49, %s2076_s1 }
 0x37c   : > { %v865_v58 = vpop.xlane.xlu2 %864 }
 0x37d   : > { %v866_v59 = vsub.f32 %v860_v54, %v865_v58 }
 0x37f   : > { %v867_v60 = vmul.f32 1.442695, %v866_v59 }
 0x381   : > { %1767 = vpow2.f32 %v867_v60 }
 0x384   : > { %v967_v62 = vpop.permute.xlu2 %966 }
 0x385   : > { %987 = vmatpush.msrb.mxu2 %v967_v62 }
 0x387   : > { %v1768_v63 = vpop.eup %1767 }
 0x388   : > { %v869_v0 = vsel %vm838_vm9, %v1768_v63, 0.0 }
 0x389   : > { %870 = vadd.xlane.f32.xlu1 %v869_v0 }
 0x38a   : > { %v944_v2 = vpop.xlane.xlu0 %943 }
 0x38b   : > { %v945_v3 = vsub.f32 %v939_v56, %v944_v2 }
 0x38d   : > { %v946_v4 = vmul.f32 1.442695, %v945_v3 }
 0x38f   : > { %1769 = vpow2.f32 %v946_v4 }
 0x395   : > { %v1770_v5 = vpop.eup %1769 }
 0x396   : > { %v948_v6 = vsel %vm838_vm9, %v1770_v5, 0.0 }
 0x397   : > { %949 = vadd.xlane.f32.xlu0 %v948_v6 }
 0x39d   : > { %v1001_v7 = vpop.permute.xlu0 %1000 }
 0x39e   : > { %1598 = vmatpush.xpose.msk.msrb.mxu1 %vm838_vm9, %v1001_v7 }
 0x3a2   : > { %1082 = vrot.lane.b32.xlu1 %v2447_v49, %s2077_s4 }
 0x3ab   : > { %998 = vrot.lane.b32.xlu0 %v2447_v49, %s2078_s24 }
 0x3fc   : > { %v871_v8 = vpop.xlane.xlu1 %870 }
 0x3fd   : > { %1771 = vrcp.f32 %v871_v8  ;;  %v883_v13 = vand.u32 2147483648, %v871_v8  ;;  %v881_v15 = vand.u32 2147483647, %v871_v8  ;;  %vm877_vm11 = vweird.f32 %v871_v8 }
 0x3ff   : > { %v884_v18 = vor.u32 1.1754944e-38, %v883_v13  ;;  %vm882_vm13 = vcmp.eq.f32.partialorder %v881_v15, 8.507059e+37 }
 0x403   : > { %v1772_v10 = vpop.eup %1771 }
 0x404   : > { %v873_v11 = vmul.f32 %v1772_v10, %v871_v8  ;;  %vm878_vm10 = vweird.f32 %v1772_v10 }
 0x405   : > { %vm879_vm12 = vmor %vm877_vm11, %vm878_vm10 }
 0x406   : > { %v874_v12 = vsub.f32 1.0, %v873_v11 }
 0x408   : > { %v875_v14 = vmul.f32 %v1772_v10, %v874_v12 }
 0x40a   : > { %v950_v16 = vpop.xlane.xlu0 %949  ;;  %v876_v17 = vadd.f32 %v1772_v10, %v875_v14 }
 0x40b   : > { %1773 = vrcp.f32 %v950_v16  ;;  %v962_v25 = vand.u32 2147483648, %v950_v16  ;;  %v960_v27 = vand.u32 2147483647, %v950_v16  ;;  %vm956_vm15 = vweird.f32 %v950_v16 }
 0x40c   : > { %v880_v19 = vsel %vm879_vm12, %v1772_v10, %v876_v17 }
 0x40d   : > { %v885_v20 = vsel %vm882_vm13, %v884_v18, %v880_v19  ;;  %v963_v29 = vor.u32 1.1754944e-38, %v962_v25  ;;  %vm961_vm2 = vcmp.eq.f32.partialorder %v960_v27, 8.507059e+37  ;;  %v1170_v18 = vld [vmem:[%s2395_s0 + $0x18] sm:$0xff]  ;;  %v1169_v19 = vld [vmem:[%s2395_s0 + $0x10] sm:$0xff]  ;;  %vm1080_vm13 = vcmask 195712  }
 0x40e   : > { %v886_v21 = vmul.f32 %v1768_v63, %v885_v20  ;;  %1190 = vmatpush.msra.mxu1 %v1170_v18  ;;  %v1168_v20 = vld [vmem:[%s2395_s0 + $0x8] sm:$0xff]  ;;  %v1756_v25 = vld [vmem:[%s723_s10] ss:$0 sm:$0xff] }
 0x410   : > { %1594 = vmatmul.msk.f32.vlgmr.msra.gmra.mxu2 %vm838_vm9, %v886_v21  ;;  %1191 = vmatpush.msra.mxu1 %v1169_v19  ;;  %v1167_v21 = vld [vmem:[%s2395_s0] sm:$0xff] }
 0x411   : > { %v1774_v22 = vpop.eup %1773  ;;  %1601 = vmatpush.xpose.msk.msra.mxu2 %vm838_vm9, %v1085_v61 }
 0x412   : > { %v952_v23 = vmul.f32 %v1774_v22, %v950_v16  ;;  %vm957_vm14 = vweird.f32 %v1774_v22  ;;  %1192 = vmatpush.msra.mxu1 %v1168_v20 }
 0x413   : > { %vm958_vm0 = vmor %vm956_vm15, %vm957_vm14  ;;  %vm1164_vm14 = vcmask 261312  }
 0x414   : > { %v953_v24 = vsub.f32 1.0, %v952_v23  ;;  %v1083_v34 = vpop.permute.xlu1 %1082  ;;  %1193 = vmatpush.msra.mxu1 %v1167_v21 }
 0x416   : > { %v954_v26 = vmul.f32 %v1774_v22, %v953_v24 }
 0x418   : > { %v955_v28 = vadd.f32 %v1774_v22, %v954_v26 }
 0x41a   : > { %v959_v30 = vsel %vm958_vm0, %v1774_v22, %v955_v28 }
 0x41b   : > { %v964_v31 = vsel %vm961_vm2, %v963_v29, %v959_v30 }
 0x41c   : > { %v965_v32 = vmul.f32 %v1770_v5, %v964_v31 }
 0x41d   : > { %v999_v33 = vpop.permute.xlu0 %998 }
 0x41e   : > { %1597 = vmatmul.msk.f32.vlgmr.msrb.gmra.mxu2 %vm838_vm9, %v965_v32  ;;  %1599 = vmatmul.msk.f32.vlgmr.msrb.gmra.mxu1 %vm838_vm9, %v999_v33 }
 0x426   : > { %1602 = vmatmul.msk.f32.vlgmr.msra.gmra.mxu2 %vm838_vm9, %v1083_v34 }
 0x493   : > { %v910_v35 = vpop.f32.mrf.mxu2 }
 0x494   : > { %913 = vst.msk [vmem:[#allocation3] sm:$0xff] %vm838_vm9, %v910_v35  ;;  %v1250_v35 = vld [vmem:[%s2404_s16 + $0x18] sm:$0xff] }
 0x49b   : > { %v1023_v36 = vpop.f32.mrf.mxu1 }
 0x49c   : > { %v1026_v37 = vsel %vm838_vm9, %v1023_v36, -inf }
 0x49d   : > { %1027 = vmax.xlane.f32.xlu2 %v1026_v37  ;;  %v1247_v37 = vld [vmem:[%s2404_s16] sm:$0xff] }
 0x4a1   : > { %v989_v38 = vpop.f32.mrf.mxu2 }
 0x4a9   : > { %v1107_v39 = vpop.f32.mrf.mxu2 }
 0x4aa   : > { %v1110_v40 = vsel %vm838_vm9, %v1107_v39, -inf }
 0x4ab   : > { %1111 = vmax.xlane.f32.xlu0 %v1110_v40 }
 0x4bf   : > { %1050 = vrot.lane.b32.xlu0 %v2447_v49, %s2079_s14 }
 0x510   : > { %v1028_v41 = vpop.xlane.xlu2 %1027 }
 0x511   : > { %v1029_v42 = vsub.f32 %v1023_v36, %v1028_v41  ;;  %v1249_v36 = vld [vmem:[%s2404_s16 + $0x10] sm:$0xff] }
 0x513   : > { %v1030_v43 = vmul.f32 1.442695, %v1029_v42 }
 0x515   : > { %1775 = vpow2.f32 %v1030_v43  ;;  %v1286_v43 = vld [vmem:[%s2414_s11 + $0x38] sm:$0xff] }
 0x516   : > { %1303 = vmatpush.msrb.mxu0 %v1286_v43 }
 0x51b   : > { %v1776_v44 = vpop.eup %1775 }
 0x51c   : > { %v1032_v45 = vsel %vm838_vm9, %v1776_v44, 0.0 }
 0x51d   : > { %1033 = vadd.xlane.f32.xlu1 %v1032_v45 }
 0x51e   : > { %v1112_v46 = vpop.xlane.xlu0 %1111 }
 0x51f   : > { %v1113_v47 = vsub.f32 %v1107_v39, %v1112_v46  ;;  %v1284_v46 = vld [vmem:[%s2414_s11 + $0x28] sm:$0xff] }
 0x521   : > { %v1114_v48 = vmul.f32 1.442695, %v1113_v47 }
 0x523   : > { %1777 = vpow2.f32 %v1114_v48  ;;  %v1283_v48 = vld [vmem:[%s2414_s11 + $0x20] sm:$0xff] }
 0x529   : > { %v1778_v50 = vpop.eup %1777 }
 0x52a   : > { %v1116_v51 = vsel %vm838_vm9, %v1778_v50, 0.0 }
 0x52b   : > { %1117 = vadd.xlane.f32.xlu2 %v1116_v51 }
 0x531   : > { %v1051_v52 = vpop.permute.xlu0 %1050 }
 0x532   : > { %1071 = vmatpush.msrb.mxu3 %v1051_v52  ;;  %v1282_v52 = vld [vmem:[%s2414_s11 + $0x18] sm:$0xff] }
 0x534   : > { %1270 = vmatpush.msra.mxu3 %v1250_v35 }
 0x536   : > { %993 = vrot.lane.b32.xlu1 %v989_v38, %s2080_s19  ;;  %1271 = vmatpush.msra.mxu3 %v1249_v36 }
 0x543   : > { %1134 = vrot.lane.b32.xlu2 %v2447_v49, %s2081_s30 }
 0x590   : > { %v1034_v53 = vpop.xlane.xlu1 %1033 }
 0x591   : > { %1779 = vrcp.f32 %v1034_v53  ;;  %v1046_v57 = vand.u32 2147483648, %v1034_v53  ;;  %v1044_v59 = vand.u32 2147483647, %v1034_v53  ;;  %vm1040_vm4 = vweird.f32 %v1034_v53 }
 0x593   : > { %v1047_v62 = vor.u32 1.1754944e-38, %v1046_v57  ;;  %vm1045_vm6 = vcmp.eq.f32.partialorder %v1044_v59, 8.507059e+37 }
 0x597   : > { %v1780_v54 = vpop.eup %1779 }
 0x598   : > { %v1036_v55 = vmul.f32 %v1780_v54, %v1034_v53  ;;  %vm1041_vm3 = vweird.f32 %v1780_v54 }
 0x599   : > { %vm1042_vm5 = vmor %vm1040_vm4, %vm1041_vm3 }
 0x59a   : > { %v1037_v56 = vsub.f32 1.0, %v1036_v55 }
 0x59c   : > { %v1038_v58 = vmul.f32 %v1780_v54, %v1037_v56 }
 0x59e   : > { %v1039_v60 = vadd.f32 %v1780_v54, %v1038_v58  ;;  %v1118_v61 = vpop.xlane.xlu2 %1117 }
 0x59f   : > { %1781 = vrcp.f32 %v1118_v61  ;;  %v1130_v7 = vand.u32 2147483648, %v1118_v61  ;;  %v1128_v10 = vand.u32 2147483647, %v1118_v61  ;;  %vm1124_vm10 = vweird.f32 %v1118_v61 }
 0x5a0   : > { %v1043_v63 = vsel %vm1042_vm5, %v1780_v54, %v1039_v60  ;;  %vm1291_vm5 = vcmask 523264  }
 0x5a1   : > { %v1048_v0 = vsel %vm1045_vm6, %v1047_v62, %v1043_v63  ;;  %v1131_v12 = vor.u32 1.1754944e-38, %v1130_v7  ;;  %vm1129_vm12 = vcmp.eq.f32.partialorder %v1128_v10, 8.507059e+37  ;;  %v1281_v7 = vld [vmem:[%s2414_s11 + $0x10] sm:$0xff]  ;;  %v1279_v10 = vld [vmem:[%s2414_s11] sm:$0xff] }
 0x5a2   : > { %v1049_v2 = vmul.f32 %v1776_v44, %v1048_v0  ;;  %v1285_v44 = vld [vmem:[%s2414_s11 + $0x30] sm:$0xff] }
 0x5a3   : > { %1304 = vmatpush.msrb.mxu0 %v1285_v44 }
 0x5a4   : > { %1600 = vmatmul.msk.f32.vlgmr.msrb.gmra.mxu3 %vm838_vm9, %v1049_v2 }
 0x5a5   : > { %v1782_v49 = vpop.eup %1781  ;;  %1305 = vmatpush.msrb.mxu0 %v1284_v46 }
 0x5a6   : > { %v1120_v3 = vmul.f32 %v1782_v49, %v1118_v61  ;;  %v1135_v4 = vpop.permute.xlu2 %1134  ;;  %vm1125_vm8 = vweird.f32 %v1782_v49 }
 0x5a7   : > { %1155 = vmatpush.msrb.mxu2 %v1135_v4  ;;  %vm1126_vm11 = vmor %vm1124_vm10, %vm1125_vm8  ;;  %1306 = vmatpush.msrb.mxu0 %v1283_v48 }
 0x5a8   : > { %v1121_v5 = vsub.f32 1.0, %v1120_v3  ;;  %v994_v6 = vpop.permute.xlu1 %993  ;;  %v1758_v3 = vld [vmem:[%s616_s5] ss:$0 sm:$0xff] }
 0x5a9   : > { %997 = vst.msk [vmem:[#allocation3] sm:$0xff] %vm996_vm7, %v994_v6  ;;  %1307 = vmatpush.msrb.mxu0 %v1282_v52 }
 0x5aa   : > { %v1122_v8 = vmul.f32 %v1782_v49, %v1121_v5 }
 0x5ab   : > { %1308 = vmatpush.msrb.mxu0 %v1281_v7 }
 0x5ac   : > { %v1123_v11 = vadd.f32 %v1782_v49, %v1122_v8  ;;  %v1280_v8 = vld [vmem:[%s2414_s11 + $0x8] sm:$0xff]  ;;  %s2670_s11 = sld [smem:[#allocation23_spill]] }
 0x5ad   : > { %1309 = vmatpush.msrb.mxu0 %v1280_v8 }
 0x5ae   : > { %v1127_v13 = vsel %vm1126_vm11, %v1782_v49, %v1123_v11  ;;  %v1759_v11 = vld [vmem:[%s731_s15] ss:$0 sm:$0xff] }
 0x5af   : > { %v1132_v14 = vsel %vm1129_vm12, %v1131_v12, %v1127_v13  ;;  %1310 = vmatpush.msrb.mxu0 %v1279_v10 }
 0x5b0   : > { %v1133_v15 = vmul.f32 %v1778_v50, %v1132_v14 }
 0x5b2   : > { %1603 = vmatmul.msk.f32.vlgmr.msrb.gmra.mxu2 %vm838_vm9, %v1133_v15  ;;  %v1760_v15 = vld [vmem:[%s739_s28] ss:$0 sm:$0xff]  ;;  %p1607_p10 = scmp.ne.s32.totalorder %s2670_s11, 1 }
 0x627   : > { %v1073_v16 = vpop.f32.mrf.mxu3 }
 0x628   : > { %1077 = vrot.lane.b32.xlu0 %v1073_v16, %s2082_s2 }
 0x635   : > { %v1157_v17 = vpop.f32.mrf.mxu2 }
 0x636   : > { %1161 = vrot.lane.b32.xlu0 %v1157_v17, %s2083_s8 }
 0x69a   : > { %v1078_v22 = vpop.permute.xlu0 %1077 }
 0x69b   : > { %1081 = vst.msk [vmem:[#allocation3] sm:$0xff] %vm1080_vm13, %v1078_v22 }
 0x6a8   : > { %v1162_v23 = vpop.permute.xlu0 %1161 }
 0x6a9   : > { %1165 = vst.msk [vmem:[#allocation3] sm:$0xff] %vm1164_vm14, %v1162_v23 }
 0x6b0   : > { %v1166_v24 = vld [vmem:[#allocation3] sm:$0xff] }
 0x6b1   : > { %1604 = vmatmul.msk.f32.vlgmr.msra.gmra.mxu1 %vm750_vm1, %v1166_v24 }
 0x72e   : > { %v1195_v26 = vpop.f32.mrf.mxu1 }
 0x72f   : > { %v1196_v27 = vadd.f32 %v1756_v25, %v1195_v26 }
 0x731   : > { %v2493_v28 = vadd.f32 %v1196_v27, %v2424_v1  ;;  %v1248_v1 = vld [vmem:[%s2404_s16 + $0x8] sm:$0xff]  ;;  %s2667_s16 = scalar_lea.vmem [#allocation10], %s2365_s13 }
 0x732   : > { %1272 = vmatpush.msra.mxu3 %v1248_v1  ;;  %v1757_v60 = vld [vmem:[%s2667_s16] ss:$0 sm:$0xff] }
 0x733   : > { %v1201_v29 = vsel %vm750_vm1, %v2493_v28, 0.0 }
 0x734   : > { %1202 = vadd.xlane.f32.xlu2 %v1201_v29  ;;  %1273 = vmatpush.msra.mxu3 %v1247_v37 }
 0x7a7   : > { %v1203_v30 = vpop.xlane.xlu2 %1202 }
 0x7a8   : > { %v1204_v31 = vmul.f32 %v1203_v30, %v2428_v9 }
 0x7aa   : > { %v1205_v32 = vsub.f32 %v2493_v28, %v1204_v31 }
 0x7ac   : > { %v1206_v33 = vmul.f32 %v1205_v32, %v1205_v32  ;;  %v1214_v2 = vmul.f32 %v1757_v60, %v1205_v32 }
 0x7ae   : > { %v1207_v34 = vsel %vm750_vm1, %v1206_v33, 0.0 }
 0x7af   : > { %1208 = vadd.xlane.f32.xlu1 %v1207_v34 }
 0x822   : > { %v1209_v38 = vpop.xlane.xlu1 %1208 }
 0x823   : > { %v1210_v39 = vmul.f32 0.032258064, %v1209_v38 }
 0x825   : > { %1783 = vrsqrt.f32 %v1210_v39  ;;  %vm1222_vm9 = vcmp.eq.f32.partialorder %v1210_v39, inf  ;;  %v1225_v51 = vand.u32 2147483648, %v1210_v39  ;;  %vm1224_vm15 = vcmp.eq.f32.partialorder %v1210_v39, 0.0 }
 0x82b   : > { %v1784_v9 = vpop.eup %1783 }
 0x82c   : > { %v1216_v40 = vmul.f32 %v1784_v9, %v1210_v39 }
 0x82e   : > { %v1217_v41 = vmul.f32 %v1784_v9, %v1216_v40 }
 0x830   : > { %v1218_v42 = vmul.f32 0.5, %v1217_v41 }
 0x832   : > { %v1219_v45 = vsub.f32 1.5, %v1218_v42 }
 0x834   : > { %v1220_v47 = vmul.f32 %v1784_v9, %v1219_v45 }
 0x836   : > { %v1221_v50 = vmul.f32 %v1220_v47, %v1210_v39 }
 0x838   : > { %v1223_v53 = vsel %vm1222_vm9, %v1210_v39, %v1221_v50 }
 0x839   : > { %v1226_v54 = vsel %vm1224_vm15, %v1225_v51, %v1223_v53 }
 0x83a   : > { %v1227_v55 = vadd.f32 1e-06, %v1226_v54 }
 0x83c   : > { %1785 = vrcp.f32 %v1227_v55  ;;  %v1239_v59 = vand.u32 2147483648, %v1227_v55  ;;  %v1237_v62 = vand.u32 2147483647, %v1227_v55  ;;  %vm1233_vm2 = vweird.f32 %v1227_v55 }
 0x83e   : > { %v1240_v0 = vor.u32 1.1754944e-38, %v1239_v59  ;;  %vm1238_vm4 = vcmp.eq.f32.partialorder %v1237_v62, 8.507059e+37 }
 0x842   : > { %v1786_v56 = vpop.eup %1785 }
 0x843   : > { %v1229_v57 = vmul.f32 %v1786_v56, %v1227_v55  ;;  %vm1234_vm0 = vweird.f32 %v1786_v56 }
 0x844   : > { %vm1235_vm3 = vmor %vm1233_vm2, %vm1234_vm0 }
 0x845   : > { %v1230_v58 = vsub.f32 1.0, %v1229_v57 }
 0x847   : > { %v1231_v61 = vmul.f32 %v1786_v56, %v1230_v58 }
 0x849   : > { %v1232_v63 = vadd.f32 %v1786_v56, %v1231_v61 }
 0x84b   : > { %v1236_v49 = vsel %vm1235_vm3, %v1786_v56, %v1232_v63 }
 0x84c   : > { %v1241_v4 = vsel %vm1238_vm4, %v1240_v0, %v1236_v49 }
 0x84d   : > { %v1242_v5 = vmul.f32 %v1241_v4, %v1214_v2 }
 0x84f   : > { %v1246_v6 = vadd.f32 %v1758_v3, %v1242_v5 }
 0x851   : > { %1605 = vmatmul.msk.f32.vlgmr.msra.gmra.mxu3 %vm750_vm1, %v1246_v6 }
 0x8d4   : > { %v1275_v12 = vpop.f32.mrf.mxu3 }
 0x8d5   : > { %v1276_v13 = vadd.f32 %v1759_v11, %v1275_v12 }
 0x8d7   : > { %v1278_v14 = vmax.f32 %v1276_v13, 0.0 }
 0x8d9   : > { %1606 = vmatmul.msk.f32.vlgmr.msrb.gmra.mxu0 %vm1291_vm5, %v1278_v14 }
 0x956   : > { %v1312_v16 = vpop.f32.mrf.mxu0 }
 0x957   : > { %v1313_v17 = vadd.f32 %v1760_v15, %v1312_v16  ;;  %1320 = sbr.rel (%p1607_p10) target bundleno = 2397 (0x95d), region = 100 }
 0x959   : > { %v1315_v18 = vadd.f32 %v1313_v17, %v2493_v28 }
 0x95b   : > { %1316 = vst.msk [vmem:[#allocation2] sm:$0xff] %vm750_vm1, %v1315_v18 }
 0x95c   : > { %1321 = vst.msk [vmem:[%s2421_s6] sm:$0xff] %vm750_vm1, %v1315_v18 }
 0x95d PF: > { %s2671_s15 = sld [smem:[#allocation24_spill]]  ;;  %s1335_s21 = sshll.u32 %s2421_s6, 4  ;;  %s1336_s21 = int_to_ptr.vmem [resolvable:$true] %s1335_s21 }
 0x95e   : > { %s2672_s25 = sld [smem:[#allocation45_spill]]  ;;  %s1323_s4 = scalar_lea.sflag [#allocation6], %s2355_s7 }
 0x963   : > { %s1609_s9 = sshll.u32 %s2671_s15, 3 }
 0x964   : > { %s2673_s12 = smov %s2672_s25  ;;  %s1333_s3 = scalar_lea.hbm %s2672_s25, %s1609_s9 }
 0x965   : > { %s1337_s1 = sshll.u32 %s1333_s3, 4  ;;  %s1957_s2 = scalar_lea.hbm %s2673_s12, 16  ;;  %s1338_s1 = int_to_ptr.hbm [resolvable:$true] %s1337_s1 }
 0x966   : > { %s1951_s24 = sshra.s32 %s1338_s1, 4  ;;  %s1952_s24 = int_to_ptr.hbm [resolvable:$true] %s1951_s24 }
 0x967   : > { %s1953_s14 = scalar_lea.hbm %s1952_s24, 8  ;;  %p1958_p6 = scmp.lt.s32.totalorder %s1952_s24, %s2673_s12 }
 0x968   : > { %p1954_p12 = scmp.ne.s32.totalorder %s1952_s24, %s1953_s14  ;;  %p1959_p8 = scmp.lt.s32.totalorder %s1957_s2, %s1953_s14 }
 0x96a   : > { %p1955_p2 = pnand %p1954_p12, %p2313_p0  ;;  %p1960_p1 = por %p1959_p8, %p1958_p6 }
 0x96c   : > { %p1956_p4 = pneg %p1955_p2 }
 0x96e   : > { %p1961_p9 = pnand %p1960_p1, %p1956_p4 }
 0x970   : > { %1964 = shalt.err (!%p1961_p9)
}
 0x971   : > { %1626 = dma.vmem_to_hbm [thread:$0]  (%p2313_p0), %s1336_s21, 128, %s1338_s1, %s1323_s4  }
 0x972 PF: > { %s2674_s7 = sld [smem:[#allocation20_spill]]  ;;  %p1649_p13 = scmp.ge.s32.totalorder %s2067_s18, 2 }
 0x974   : > { %p1645_p11 = pnand %p1649_p13, %p2325_p3 }
 0x976   : > { %p1646_p5 = pneg %p1645_p11 }
 0x978   : > { %s1349_s29 = sand.u32 1, %s2674_s7  }
 0x979   : > { %s1350_s27 = scalar_lea.sflag [#allocation6], %s1349_s29 }
 0x97a   : > { %2022 = dma.done.wait (%p1646_p5), %s1350_s27, 128  }
 0x97b   : > { %2024 = vsyncadd (%p1646_p5), %s1350_s27, 4294967168  ;;  %s35_s18 = sadd.s32 1, %s2067_s18   ;;  %s2676_s25 = sld [smem:[#allocation18_spill]] }
 0x97c   : > { %p32_p7 = scmp.ge.s32.totalorder %s35_s18, 6   ;;  %s2677_s26 = sld [smem:[#allocation19_spill]] }
 0x97d   : > { %s2678_s27 = sld [smem:[#allocation28_spill]] }
 0x97e   : > { %s2679_s28 = sld [smem:[#allocation21_spill]] }
 0x97f   : > { %s2680_s29 = sld [smem:[#allocation22_spill]] }
 0x980   : > { %s2681_s30 = sld [smem:[#allocation30_spill]]  ;;  %34 = sbr.rel (!%p32_p7) target bundleno = 28 (0x1c), region = 197 }
 0x981   : > { %s2682_s14 = sld [smem:[#allocation25_spill]] }
 0x982   : > { %s2683_s15 = sld [smem:[#allocation26_spill]] }
 0x983   : > { %s2684_s16 = sld [smem:[#allocation27_spill]] }
 0x984   : > { %s2685_s17 = sld [smem:[#allocation29_spill]] }
 0x985   :  { %1356 = vsyncpa [#allocation5], 1 }
 0x986   :  { %1358 = vsyncpa [#allocation5 + $0x1], 1 }
 0x987   :  { %1359 = vsyncpa [#allocation8], 1 }
 0x988   :  { %1361 = vsyncpa [#allocation8 + $0x1], 1 }
 0x989   :  { %1362 = vsyncpa [#allocation11], 1 }
 0x98a   :  { %1364 = vsyncpa [#allocation11 + $0x1], 1 }
 0x98b   :  { %1365 = vsyncpa [#allocation6], 1 }
 0x98c   :  { %1367 = vsyncpa [#allocation6 + $0x1], 1 }

</bundles_post_ra>
